<compile_context>
chip_gen: v6e
topology: v6e:2x2x1
jax: 0.10.0
libtpu: 0.0.40
codegen_flags: <defaults>
</compile_context>

<pallas_src>
import jax
import jax.numpy as jnp
from jax import lax
from jax.experimental import pallas as pl
from jax.experimental.pallas import tpu as pltpu


def _sae_kernel(x_ref,
                we1_ref, be1_ref, we2_ref, be2_ref, weo_ref, beo_ref,
                wd1_ref, bd1_ref, wd2_ref, bd2_ref, wdo_ref, bdo_ref,
                lamb_ref,
                recon_ref, sparse_ref):
    """One (TB, input_dim) batch tile: encoder -> soft-threshold -> decoder."""
    cdt = jnp.bfloat16      # MXU operand dtype
    f32 = jnp.float32       # accumulation / VPU-EUP dtype

    x = x_ref[...].astype(cdt)

    # ---------------- encoder ----------------
    # bias add + tanh in f32; result stored once as bf16 (next MXU operand).
    h = jnp.tanh(jnp.dot(x, we1_ref[...], preferred_element_type=f32)
                 + be1_ref[...]).astype(cdt)
    h = jnp.tanh(jnp.dot(h, we2_ref[...], preferred_element_type=f32)
                 + be2_ref[...]).astype(cdt)
    latent = jnp.dot(h, weo_ref[...], preferred_element_type=f32) + beo_ref[...]

    # ---------------- soft threshold (complex-magnitude shrinkage), sqrt-free ----
    #   relu(|z| - lamb) / |z| == relu(1 - lamb * rsqrt(|z|^2))   for |z| > 0,
    # and the rsqrt(eps) guard drives scale to 0 at |z| ~ 0 (lamb = |lamb| > 0),
    # matching torch's NaN->0 fix-up.
    lamb = lamb_ref[0]                                  # scalar from SMEM
    half = latent.shape[1] // 2
    re = latent[:, :half]
    im = latent[:, half:]
    inv_mag = lax.rsqrt(jnp.maximum(re * re + im * im, 1e-30))
    scale = jnp.maximum(1.0 - lamb * inv_mag, 0.0)
    sparse_ref[:, :half] = re * scale
    sparse_ref[:, half:] = im * scale

    # ---------------- decoder ----------------
    # First layer reads the just-written sparse tile straight back from VMEM so it
    # is one K=input_dim MXU pass (the two half-stores above precede this read in
    # program order on the same ref).
    sp = sparse_ref[...].astype(cdt)
    d = jnp.tanh(jnp.dot(sp, wd1_ref[...], preferred_element_type=f32)
                 + bd1_ref[...]).astype(cdt)
    d = jnp.tanh(jnp.dot(d, wd2_ref[...], preferred_element_type=f32)
                 + bd2_ref[...]).astype(cdt)
    recon_ref[...] = (jnp.dot(d, wdo_ref[...], preferred_element_type=f32)
                      + bdo_ref[...])


def _build_call(TB, num_tiles, B_pad, input_dim, hidden_dim, output_dim,
                param_bytes, single_buffer_weights):
    """Construct the pallas_call callable for one configuration."""

    def tiled(shape):
        return pl.BlockSpec(shape, lambda i: (i, 0))

    def resident(shape):
        # Constant index_map -> block fetched once, reused every grid step.
        zeros = (0,) * len(shape)
        if single_buffer_weights:
            return pl.BlockSpec(shape, lambda i, _z=zeros: _z,
                                pipeline_mode=pl.Buffered(1))
        return pl.BlockSpec(shape, lambda i, _z=zeros: _z)

    in_specs = [
        tiled((TB, input_dim)),                                          # x
        resident((input_dim, hidden_dim)), resident((1, hidden_dim)),    # enfc1
        resident((hidden_dim, hidden_dim)), resident((1, hidden_dim)),   # enfc2
        resident((hidden_dim, input_dim)), resident((1, input_dim)),     # enfco
        resident((input_dim, hidden_dim)), resident((1, hidden_dim)),    # defc1
        resident((hidden_dim, hidden_dim)), resident((1, hidden_dim)),   # defc2
        resident((hidden_dim, output_dim)), resident((1, output_dim)),   # defco
        pl.BlockSpec(memory_space=pltpu.MemorySpace.SMEM),               # |lamb|
    ]
    out_specs = (tiled((TB, output_dim)), tiled((TB, input_dim)))

    # ---------------- VMEM budget ----------------
    try:
        phys_vmem = int(pltpu.get_tpu_info().vmem_capacity_bytes)
    except Exception:                       # best effort; assume worst case (v7x)
        phys_vmem = 64 << 20
    vmem_cap = int(phys_vmem * 0.8)         # leave compiler-scratch headroom

    weight_buffers = 1 if single_buffer_weights else 2
    param_vmem = weight_buffers * param_bytes
    act_vmem = 2 * 4 * TB * (2 * input_dim + output_dim)     # x/recon/sparse, 2-buf
    # live temps: latent/re/im/scale/d, bf16 cast copies, MXU accumulators (~8 tiles)
    temp_vmem = 8 * 4 * TB * max(hidden_dim, input_dim)
    vmem_limit = int(min(max(param_vmem + act_vmem + temp_vmem + (6 << 20),
                             24 << 20),
                         vmem_cap))

    flops = 2 * B_pad * (2 * input_dim * hidden_dim
                         + 2 * hidden_dim * hidden_dim
                         + hidden_dim * input_dim
                         + hidden_dim * output_dim)
    transcendentals = B_pad * (4 * hidden_dim + input_dim // 2)   # 4x tanh + rsqrt
    bytes_accessed = (B_pad * input_dim * 4 + param_bytes
                      + B_pad * (output_dim + input_dim) * 4)

    return pl.pallas_call(
        _sae_kernel,
        grid=(num_tiles,),
        in_specs=in_specs,
        out_specs=out_specs,
        out_shape=(jax.ShapeDtypeStruct((B_pad, output_dim), jnp.float32),
                   jax.ShapeDtypeStruct((B_pad, input_dim), jnp.float32)),
        compiler_params=pltpu.CompilerParams(
            # Batch axis is embarrassingly parallel; with num_tiles >= 2 it can
            # shard across the two TensorCores on v7x (harmless on v5e/v6e).
            dimension_semantics=(pltpu.PARALLEL,),
            vmem_limit_bytes=vmem_limit),
        cost_estimate=pl.CostEstimate(flops=int(flops),
                                      transcendentals=int(transcendentals),
                                      bytes_accessed=int(bytes_accessed)),
    )


def sparse_autoencoder_forward(x, params, *, batch_tile=None):
    """x: (B, input_dim) f32 -> (reconstructed (B, out_dim), latent_sparse (B, in_dim))."""
    B, input_dim = x.shape
    hidden_dim = params["we1"].shape[1]
    output_dim = params["wdo"].shape[1]

    if batch_tile is None:
        b8 = max(8, -(-B // 8) * 8)                 # sublane-aligned batch
        # TB=256 already fills the MXU M dim; only grow to 512 when the batch is
        # large enough that >=2 grid steps remain (keeps the v7x 2-TC split live
        # and amortizes the ~0.35us/step pipeline overhead on v6e).
        batch_tile = min(b8, 512 if b8 >= 1024 else 256)
    TB = int(batch_tile)
    num_tiles = pl.cdiv(B, TB)
    B_pad = num_tiles * TB
    xp = x if B_pad == B else jnp.pad(x, ((0, B_pad - B), (0, 0)))

    lamb_abs = jnp.abs(params["lamb"]).reshape(1).astype(jnp.float32)
    param_bytes = sum(int(v.size) * v.dtype.itemsize
                      for k, v in params.items() if k != "lamb")

    args = (xp,
            params["we1"], params["be1"], params["we2"], params["be2"],
            params["weo"], params["beo"],
            params["wd1"], params["bd1"], params["wd2"], params["bd2"],
            params["wdo"], params["bdo"],
            lamb_abs)

    # TODO(synk): in the small-batch / repeated-inference regime the one-time weight
    # DMA is fully exposed before any compute; a cross-call weight prefetch (P10)
    # would hide it behind the preceding op.
    try:
        call = _build_call(TB, num_tiles, B_pad, input_dim, hidden_dim,
                           output_dim, param_bytes, single_buffer_weights=True)
        recon, sparse = call(*args)
    except Exception:
        # Fallback if this jax build rejects pipeline_mode=pl.Buffered(1).
        call = _build_call(TB, num_tiles, B_pad, input_dim, hidden_dim,
                           output_dim, param_bytes, single_buffer_weights=False)
        recon, sparse = call(*args)

    if B_pad != B:
        recon = recon[:B]
        sparse = sparse[:B]
    return recon, sparse


def init_params(key, input_dim, hidden_dim, output_dim=None):
    """Deterministic init mimicking nn.Linear default U(-1/sqrt(fan_in), +).

    Weights stored (in, out) in bf16 (MXU operand dtype); biases / lamb in f32.
    """
    if output_dim is None:
        output_dim = input_dim

    def linear(k, fan_in, fan_out):
        kw, kb = jax.random.split(k)
        bound = 1.0 / jnp.sqrt(jnp.float32(fan_in))
        w = jax.random.uniform(kw, (fan_in, fan_out), jnp.float32,
                               -bound, bound).astype(jnp.bfloat16)
        b = jax.random.uniform(kb, (1, fan_out), jnp.float32, -bound, bound)
        return w, b

    keys = jax.random.split(key, 6)
    we1, be1 = linear(keys[0], input_dim, hidden_dim)
    we2, be2 = linear(keys[1], hidden_dim, hidden_dim)
    weo, beo = linear(keys[2], hidden_dim, input_dim)
    wd1, bd1 = linear(keys[3], input_dim, hidden_dim)
    wd2, bd2 = linear(keys[4], hidden_dim, hidden_dim)
    wdo, bdo = linear(keys[5], hidden_dim, output_dim)
    return dict(we1=we1, be1=be1, we2=we2, be2=be2, weo=weo, beo=beo,
                wd1=wd1, bd1=bd1, wd2=wd2, bd2=bd2, wdo=wdo, bdo=bdo,
                lamb=jnp.array([0.01], dtype=jnp.float32))


def _reference_forward(x, p):
    """Pure-JAX reference mirroring the PyTorch module (same bf16-operand / f32-
    accumulation matmul convention as the kernel) for a sanity check."""
    cdt = jnp.bfloat16

    def mm(a, w):
        return jnp.dot(a.astype(cdt), w.astype(cdt),
                       preferred_element_type=jnp.float32)

    h = jnp.tanh(mm(x, p["we1"]) + p["be1"])
    h = jnp.tanh(mm(h, p["we2"]) + p["be2"])
    latent = mm(h, p["weo"]) + p["beo"]
    lamb = jnp.abs(p["lamb"][0])
    half = latent.shape[1] // 2
    re, im = latent[:, :half], latent[:, half:]
    mag = jnp.sqrt(re * re + im * im)
    safe = jnp.where(mag > 0.0, mag, 1.0)
    scale = jnp.where(mag > 0.0, jnp.maximum(mag - lamb, 0.0) / safe, 0.0)
    sparse = jnp.concatenate([re * scale, im * scale], axis=1)
    d = jnp.tanh(mm(sparse, p["wd1"]) + p["bd1"])
    d = jnp.tanh(mm(d, p["wd2"]) + p["bd2"])
    recon = mm(d, p["wdo"]) + p["bdo"]
    return recon, sparse


if __name__ == "__main__":
    # Small but lane-aligned demo shapes: input_dim=256 (half=128), hidden_dim=256.
    B, INPUT_DIM, HIDDEN_DIM = 16, 256, 256

    key = jax.random.PRNGKey(0)
    k_x, k_p = jax.random.split(key)
    x = jax.random.normal(k_x, (B, INPUT_DIM), dtype=jnp.float32)
    params = init_params(k_p, INPUT_DIM, HIDDEN_DIM)

    recon, sparse = sparse_autoencoder_forward(x, params)
    jax.block_until_ready((recon, sparse))

    recon_exp, sparse_exp = _reference_forward(x, params)
    assert recon.shape == (B, INPUT_DIM) and sparse.shape == (B, INPUT_DIM)
    assert jnp.allclose(recon, recon_exp, atol=1e-2, rtol=1e-2), \
        float(jnp.max(jnp.abs(recon - recon_exp)))
    assert jnp.allclose(sparse, sparse_exp, atol=1e-2, rtol=1e-2), \
        float(jnp.max(jnp.abs(sparse - sparse_exp)))

    print("KERNEL_OK")
</pallas_src>

<mosaic_0001>
module attributes {stable_mosaic.version = 11 : i64} {
  func.func @_sae_kernel(%arg0: i32, %arg1: memref<16x256xf32, #tpu.memory_space<vmem>>, %arg2: memref<256x256xbf16, #tpu.memory_space<vmem>>, %arg3: memref<1x256xf32, #tpu.memory_space<vmem>>, %arg4: memref<256x256xbf16, #tpu.memory_space<vmem>>, %arg5: memref<1x256xf32, #tpu.memory_space<vmem>>, %arg6: memref<256x256xbf16, #tpu.memory_space<vmem>>, %arg7: memref<1x256xf32, #tpu.memory_space<vmem>>, %arg8: memref<256x256xbf16, #tpu.memory_space<vmem>>, %arg9: memref<1x256xf32, #tpu.memory_space<vmem>>, %arg10: memref<256x256xbf16, #tpu.memory_space<vmem>>, %arg11: memref<1x256xf32, #tpu.memory_space<vmem>>, %arg12: memref<256x256xbf16, #tpu.memory_space<vmem>>, %arg13: memref<1x256xf32, #tpu.memory_space<vmem>>, %arg14: memref<1xf32, #tpu.memory_space<smem>>, %arg15: memref<16x256xf32, #tpu.memory_space<vmem>>, %arg16: memref<16x256xf32, #tpu.memory_space<vmem>>) attributes {dimension_semantics = [#tpu.dimension_semantics<parallel>], iteration_bounds = array<i64: 1>, scalar_prefetch = 0 : i64, scratch_operands = 0 : i64, tpu.core_type = #tpu.core_type<tc>, window_params = [{transform_indices = @transform_0, window_bounds = array<i64: 16, 256>}, {pipeline_mode = #tpu.pipeline_mode<synchronous>, transform_indices = @transform_1, window_bounds = array<i64: 256, 256>}, {pipeline_mode = #tpu.pipeline_mode<synchronous>, transform_indices = @transform_2, window_bounds = array<i64: 1, 256>}, {pipeline_mode = #tpu.pipeline_mode<synchronous>, transform_indices = @transform_3, window_bounds = array<i64: 256, 256>}, {pipeline_mode = #tpu.pipeline_mode<synchronous>, transform_indices = @transform_4, window_bounds = array<i64: 1, 256>}, {pipeline_mode = #tpu.pipeline_mode<synchronous>, transform_indices = @transform_5, window_bounds = array<i64: 256, 256>}, {pipeline_mode = #tpu.pipeline_mode<synchronous>, transform_indices = @transform_6, window_bounds = array<i64: 1, 256>}, {pipeline_mode = #tpu.pipeline_mode<synchronous>, transform_indices = @transform_7, window_bounds = array<i64: 256, 256>}, {pipeline_mode = #tpu.pipeline_mode<synchronous>, transform_indices = @transform_8, window_bounds = array<i64: 1, 256>}, {pipeline_mode = #tpu.pipeline_mode<synchronous>, transform_indices = @transform_9, window_bounds = array<i64: 256, 256>}, {pipeline_mode = #tpu.pipeline_mode<synchronous>, transform_indices = @transform_10, window_bounds = array<i64: 1, 256>}, {pipeline_mode = #tpu.pipeline_mode<synchronous>, transform_indices = @transform_11, window_bounds = array<i64: 256, 256>}, {pipeline_mode = #tpu.pipeline_mode<synchronous>, transform_indices = @transform_12, window_bounds = array<i64: 1, 256>}, {transform_indices = @transform_13, window_bounds = array<i64: 1>}, {transform_indices = @transform_14, window_bounds = array<i64: 16, 256>}, {transform_indices = @transform_15, window_bounds = array<i64: 16, 256>}]} {
    %c0 = arith.constant 0 : index
    %c0_0 = arith.constant 0 : index
    %0 = vector.load %arg1[%c0, %c0_0] : memref<16x256xf32, #tpu.memory_space<vmem>>, vector<16x256xf32>
    %1 = arith.truncf %0 : vector<16x256xf32> to vector<16x256xbf16>
    %c0_1 = arith.constant 0 : index
    %c0_2 = arith.constant 0 : index
    %2 = vector.load %arg2[%c0_1, %c0_2] : memref<256x256xbf16, #tpu.memory_space<vmem>>, vector<256x256xbf16>
    %cst = arith.constant dense<0.000000e+00> : vector<16x256xf32>
    %3 = tpu.matmul %1, %2, %cst {dimension_numbers = #tpu.dot_dimension_numbers<[1], [0], [0], [1], [0, 0, 1, 1], [], []>} : vector<16x256xbf16>, vector<256x256xbf16>, vector<16x256xf32> -> vector<16x256xf32>
    %c0_3 = arith.constant 0 : index
    %c0_4 = arith.constant 0 : index
    %4 = vector.load %arg3[%c0_3, %c0_4] : memref<1x256xf32, #tpu.memory_space<vmem>>, vector<1x256xf32>
    %5 = vector.broadcast %4 : vector<1x256xf32> to vector<16x256xf32>
    %6 = arith.addf %3, %5 : vector<16x256xf32>
    %7 = math.tanh %6 : vector<16x256xf32>
    %8 = arith.truncf %7 : vector<16x256xf32> to vector<16x256xbf16>
    %c0_5 = arith.constant 0 : index
    %c0_6 = arith.constant 0 : index
    %9 = vector.load %arg4[%c0_5, %c0_6] : memref<256x256xbf16, #tpu.memory_space<vmem>>, vector<256x256xbf16>
    %cst_7 = arith.constant dense<0.000000e+00> : vector<16x256xf32>
    %10 = tpu.matmul %8, %9, %cst_7 {dimension_numbers = #tpu.dot_dimension_numbers<[1], [0], [0], [1], [0, 0, 1, 1], [], []>} : vector<16x256xbf16>, vector<256x256xbf16>, vector<16x256xf32> -> vector<16x256xf32>
    %c0_8 = arith.constant 0 : index
    %c0_9 = arith.constant 0 : index
    %11 = vector.load %arg5[%c0_8, %c0_9] : memref<1x256xf32, #tpu.memory_space<vmem>>, vector<1x256xf32>
    %12 = vector.broadcast %11 : vector<1x256xf32> to vector<16x256xf32>
    %13 = arith.addf %10, %12 : vector<16x256xf32>
    %14 = math.tanh %13 : vector<16x256xf32>
    %15 = arith.truncf %14 : vector<16x256xf32> to vector<16x256xbf16>
    %c0_10 = arith.constant 0 : index
    %c0_11 = arith.constant 0 : index
    %16 = vector.load %arg6[%c0_10, %c0_11] : memref<256x256xbf16, #tpu.memory_space<vmem>>, vector<256x256xbf16>
    %cst_12 = arith.constant dense<0.000000e+00> : vector<16x256xf32>
    %17 = tpu.matmul %15, %16, %cst_12 {dimension_numbers = #tpu.dot_dimension_numbers<[1], [0], [0], [1], [0, 0, 1, 1], [], []>} : vector<16x256xbf16>, vector<256x256xbf16>, vector<16x256xf32> -> vector<16x256xf32>
    %c0_13 = arith.constant 0 : index
    %c0_14 = arith.constant 0 : index
    %18 = vector.load %arg7[%c0_13, %c0_14] : memref<1x256xf32, #tpu.memory_space<vmem>>, vector<1x256xf32>
    %19 = vector.broadcast %18 : vector<1x256xf32> to vector<16x256xf32>
    %20 = arith.addf %17, %19 : vector<16x256xf32>
    %c0_15 = arith.constant 0 : index
    %21 = memref.load %arg14[%c0_15] : memref<1xf32, #tpu.memory_space<smem>>
    %22 = vector.extract_strided_slice %20 {offsets = [0, 0], sizes = [16, 128], strides = [1, 1]} : vector<16x256xf32> to vector<16x128xf32>
    %23 = vector.extract_strided_slice %20 {offsets = [0, 128], sizes = [16, 128], strides = [1, 1]} : vector<16x256xf32> to vector<16x128xf32>
    %24 = arith.mulf %22, %22 : vector<16x128xf32>
    %25 = arith.mulf %23, %23 : vector<16x128xf32>
    %26 = arith.addf %24, %25 : vector<16x128xf32>
    %cst_16 = arith.constant 1.000000e-30 : f32
    %27 = vector.broadcast %cst_16 : f32 to vector<16x128xf32>
    %28 = arith.maximumf %26, %27 : vector<16x128xf32>
    %29 = math.rsqrt %28 : vector<16x128xf32>
    %30 = vector.broadcast %21 : f32 to vector<16x128xf32>
    %31 = arith.mulf %30, %29 : vector<16x128xf32>
    %cst_17 = arith.constant 1.000000e+00 : f32
    %32 = vector.broadcast %cst_17 : f32 to vector<16x128xf32>
    %33 = arith.subf %32, %31 : vector<16x128xf32>
    %cst_18 = arith.constant 0.000000e+00 : f32
    %34 = vector.broadcast %cst_18 : f32 to vector<16x128xf32>
    %35 = arith.maximumf %33, %34 : vector<16x128xf32>
    %36 = arith.mulf %22, %35 : vector<16x128xf32>
    %c0_19 = arith.constant 0 : index
    %c0_20 = arith.constant 0 : index
    %37 = vector.load %arg16[%c0_19, %c0_20] : memref<16x256xf32, #tpu.memory_space<vmem>>, vector<16x128xf32>
    tpu.vector_store %arg16[%c0_19, %c0_20], %36 {strides = array<i32>} : memref<16x256xf32, #tpu.memory_space<vmem>>, vector<16x128xf32>,
    %38 = arith.mulf %23, %35 : vector<16x128xf32>
    %c0_21 = arith.constant 0 : index
    %c128 = arith.constant 128 : index
    %39 = vector.load %arg16[%c0_21, %c128] : memref<16x256xf32, #tpu.memory_space<vmem>>, vector<16x128xf32>
    tpu.vector_store %arg16[%c0_21, %c128], %38 {strides = array<i32>} : memref<16x256xf32, #tpu.memory_space<vmem>>, vector<16x128xf32>,
    %c0_22 = arith.constant 0 : index
    %c0_23 = arith.constant 0 : index
    %40 = vector.load %arg16[%c0_22, %c0_23] : memref<16x256xf32, #tpu.memory_space<vmem>>, vector<16x256xf32>
    %41 = arith.truncf %40 : vector<16x256xf32> to vector<16x256xbf16>
    %c0_24 = arith.constant 0 : index
    %c0_25 = arith.constant 0 : index
    %42 = vector.load %arg8[%c0_24, %c0_25] : memref<256x256xbf16, #tpu.memory_space<vmem>>, vector<256x256xbf16>
    %cst_26 = arith.constant dense<0.000000e+00> : vector<16x256xf32>
    %43 = tpu.matmul %41, %42, %cst_26 {dimension_numbers = #tpu.dot_dimension_numbers<[1], [0], [0], [1], [0, 0, 1, 1], [], []>} : vector<16x256xbf16>, vector<256x256xbf16>, vector<16x256xf32> -> vector<16x256xf32>
    %c0_27 = arith.constant 0 : index
    %c0_28 = arith.constant 0 : index
    %44 = vector.load %arg9[%c0_27, %c0_28] : memref<1x256xf32, #tpu.memory_space<vmem>>, vector<1x256xf32>
    %45 = vector.broadcast %44 : vector<1x256xf32> to vector<16x256xf32>
    %46 = arith.addf %43, %45 : vector<16x256xf32>
    %47 = math.tanh %46 : vector<16x256xf32>
    %48 = arith.truncf %47 : vector<16x256xf32> to vector<16x256xbf16>
    %c0_29 = arith.constant 0 : index
    %c0_30 = arith.constant 0 : index
    %49 = vector.load %arg10[%c0_29, %c0_30] : memref<256x256xbf16, #tpu.memory_space<vmem>>, vector<256x256xbf16>
    %cst_31 = arith.constant dense<0.000000e+00> : vector<16x256xf32>
    %50 = tpu.matmul %48, %49, %cst_31 {dimension_numbers = #tpu.dot_dimension_numbers<[1], [0], [0], [1], [0, 0, 1, 1], [], []>} : vector<16x256xbf16>, vector<256x256xbf16>, vector<16x256xf32> -> vector<16x256xf32>
    %c0_32 = arith.constant 0 : index
    %c0_33 = arith.constant 0 : index
    %51 = vector.load %arg11[%c0_32, %c0_33] : memref<1x256xf32, #tpu.memory_space<vmem>>, vector<1x256xf32>
    %52 = vector.broadcast %51 : vector<1x256xf32> to vector<16x256xf32>
    %53 = arith.addf %50, %52 : vector<16x256xf32>
    %54 = math.tanh %53 : vector<16x256xf32>
    %55 = arith.truncf %54 : vector<16x256xf32> to vector<16x256xbf16>
    %c0_34 = arith.constant 0 : index
    %c0_35 = arith.constant 0 : index
    %56 = vector.load %arg12[%c0_34, %c0_35] : memref<256x256xbf16, #tpu.memory_space<vmem>>, vector<256x256xbf16>
    %cst_36 = arith.constant dense<0.000000e+00> : vector<16x256xf32>
    %57 = tpu.matmul %55, %56, %cst_36 {dimension_numbers = #tpu.dot_dimension_numbers<[1], [0], [0], [1], [0, 0, 1, 1], [], []>} : vector<16x256xbf16>, vector<256x256xbf16>, vector<16x256xf32> -> vector<16x256xf32>
    %c0_37 = arith.constant 0 : index
    %c0_38 = arith.constant 0 : index
    %58 = vector.load %arg13[%c0_37, %c0_38] : memref<1x256xf32, #tpu.memory_space<vmem>>, vector<1x256xf32>
    %59 = vector.broadcast %58 : vector<1x256xf32> to vector<16x256xf32>
    %60 = arith.addf %57, %59 : vector<16x256xf32>
    %c0_39 = arith.constant 0 : index
    %c0_40 = arith.constant 0 : index
    %61 = vector.load %arg15[%c0_39, %c0_40] : memref<16x256xf32, #tpu.memory_space<vmem>>, vector<16x256xf32>
    tpu.vector_store %arg15[%c0_39, %c0_40], %60 {strides = array<i32>} : memref<16x256xf32, #tpu.memory_space<vmem>>, vector<16x256xf32>,
    return
  }
  func.func @transform_0(%arg0: i32) -> (i32, i32) {
    %c0_i32 = arith.constant 0 : i32
    %c0_i32_0 = arith.constant 0 : i32
    return %arg0, %c0_i32 : i32, i32
  }
  func.func @transform_1(%arg0: i32) -> (i32, i32) {
    %c0_i32 = arith.constant 0 : i32
    %c0_i32_0 = arith.constant 0 : i32
    %c0_i32_1 = arith.constant 0 : i32
    return %c0_i32, %c0_i32_0 : i32, i32
  }
  func.func @transform_2(%arg0: i32) -> (i32, i32) {
    %c0_i32 = arith.constant 0 : i32
    %c0_i32_0 = arith.constant 0 : i32
    %c0_i32_1 = arith.constant 0 : i32
    return %c0_i32, %c0_i32_0 : i32, i32
  }
  func.func @transform_3(%arg0: i32) -> (i32, i32) {
    %c0_i32 = arith.constant 0 : i32
    %c0_i32_0 = arith.constant 0 : i32
    %c0_i32_1 = arith.constant 0 : i32
    return %c0_i32, %c0_i32_0 : i32, i32
  }
  func.func @transform_4(%arg0: i32) -> (i32, i32) {
    %c0_i32 = arith.constant 0 : i32
    %c0_i32_0 = arith.constant 0 : i32
    %c0_i32_1 = arith.constant 0 : i32
    return %c0_i32, %c0_i32_0 : i32, i32
  }
  func.func @transform_5(%arg0: i32) -> (i32, i32) {
    %c0_i32 = arith.constant 0 : i32
    %c0_i32_0 = arith.constant 0 : i32
    %c0_i32_1 = arith.constant 0 : i32
    return %c0_i32, %c0_i32_0 : i32, i32
  }
  func.func @transform_6(%arg0: i32) -> (i32, i32) {
    %c0_i32 = arith.constant 0 : i32
    %c0_i32_0 = arith.constant 0 : i32
    %c0_i32_1 = arith.constant 0 : i32
    return %c0_i32, %c0_i32_0 : i32, i32
  }
  func.func @transform_7(%arg0: i32) -> (i32, i32) {
    %c0_i32 = arith.constant 0 : i32
    %c0_i32_0 = arith.constant 0 : i32
    %c0_i32_1 = arith.constant 0 : i32
    return %c0_i32, %c0_i32_0 : i32, i32
  }
  func.func @transform_8(%arg0: i32) -> (i32, i32) {
    %c0_i32 = arith.constant 0 : i32
    %c0_i32_0 = arith.constant 0 : i32
    %c0_i32_1 = arith.constant 0 : i32
    return %c0_i32, %c0_i32_0 : i32, i32
  }
  func.func @transform_9(%arg0: i32) -> (i32, i32) {
    %c0_i32 = arith.constant 0 : i32
    %c0_i32_0 = arith.constant 0 : i32
    %c0_i32_1 = arith.constant 0 : i32
    return %c0_i32, %c0_i32_0 : i32, i32
  }
  func.func @transform_10(%arg0: i32) -> (i32, i32) {
    %c0_i32 = arith.constant 0 : i32
    %c0_i32_0 = arith.constant 0 : i32
    %c0_i32_1 = arith.constant 0 : i32
    return %c0_i32, %c0_i32_0 : i32, i32
  }
  func.func @transform_11(%arg0: i32) -> (i32, i32) {
    %c0_i32 = arith.constant 0 : i32
    %c0_i32_0 = arith.constant 0 : i32
    %c0_i32_1 = arith.constant 0 : i32
    return %c0_i32, %c0_i32_0 : i32, i32
  }
  func.func @transform_12(%arg0: i32) -> (i32, i32) {
    %c0_i32 = arith.constant 0 : i32
    %c0_i32_0 = arith.constant 0 : i32
    %c0_i32_1 = arith.constant 0 : i32
    return %c0_i32, %c0_i32_0 : i32, i32
  }
  func.func @transform_13(%arg0: i32) -> i32 {
    %c0_i32 = arith.constant 0 : i32
    %c0_i32_0 = arith.constant 0 : i32
    return %c0_i32 : i32
  }
  func.func @transform_14(%arg0: i32) -> (i32, i32) {
    %c0_i32 = arith.constant 0 : i32
    %c0_i32_0 = arith.constant 0 : i32
    return %arg0, %c0_i32 : i32, i32
  }
  func.func @transform_15(%arg0: i32) -> (i32, i32) {
    %c0_i32 = arith.constant 0 : i32
    %c0_i32_0 = arith.constant 0 : i32
    return %arg0, %c0_i32 : i32, i32
  }
}

module attributes {stable_mosaic.version = 11 : i64} {
  func.func @_sae_kernel(%arg0: i32, %arg1: memref<16x256xf32, #tpu.memory_space<vmem>>, %arg2: memref<256x256xbf16, #tpu.memory_space<vmem>>, %arg3: memref<1x256xf32, #tpu.memory_space<vmem>>, %arg4: memref<256x256xbf16, #tpu.memory_space<vmem>>, %arg5: memref<1x256xf32, #tpu.memory_space<vmem>>, %arg6: memref<256x256xbf16, #tpu.memory_space<vmem>>, %arg7: memref<1x256xf32, #tpu.memory_space<vmem>>, %arg8: memref<256x256xbf16, #tpu.memory_space<vmem>>, %arg9: memref<1x256xf32, #tpu.memory_space<vmem>>, %arg10: memref<256x256xbf16, #tpu.memory_space<vmem>>, %arg11: memref<1x256xf32, #tpu.memory_space<vmem>>, %arg12: memref<256x256xbf16, #tpu.memory_space<vmem>>, %arg13: memref<1x256xf32, #tpu.memory_space<vmem>>, %arg14: memref<1xf32, #tpu.memory_space<smem>>, %arg15: memref<16x256xf32, #tpu.memory_space<vmem>>, %arg16: memref<16x256xf32, #tpu.memory_space<vmem>>) attributes {dimension_semantics = [#tpu.dimension_semantics<parallel>], iteration_bounds = array<i64: 1>, scalar_prefetch = 0 : i64, scratch_operands = 0 : i64, tpu.core_type = #tpu.core_type<tc>, window_params = [{transform_indices = @transform_0, window_bounds = array<i64: 16, 256>}, {pipeline_mode = #tpu.pipeline_mode<synchronous>, transform_indices = @transform_1, window_bounds = array<i64: 256, 256>}, {pipeline_mode = #tpu.pipeline_mode<synchronous>, transform_indices = @transform_2, window_bounds = array<i64: 1, 256>}, {pipeline_mode = #tpu.pipeline_mode<synchronous>, transform_indices = @transform_3, window_bounds = array<i64: 256, 256>}, {pipeline_mode = #tpu.pipeline_mode<synchronous>, transform_indices = @transform_4, window_bounds = array<i64: 1, 256>}, {pipeline_mode = #tpu.pipeline_mode<synchronous>, transform_indices = @transform_5, window_bounds = array<i64: 256, 256>}, {pipeline_mode = #tpu.pipeline_mode<synchronous>, transform_indices = @transform_6, window_bounds = array<i64: 1, 256>}, {pipeline_mode = #tpu.pipeline_mode<synchronous>, transform_indices = @transform_7, window_bounds = array<i64: 256, 256>}, {pipeline_mode = #tpu.pipeline_mode<synchronous>, transform_indices = @transform_8, window_bounds = array<i64: 1, 256>}, {pipeline_mode = #tpu.pipeline_mode<synchronous>, transform_indices = @transform_9, window_bounds = array<i64: 256, 256>}, {pipeline_mode = #tpu.pipeline_mode<synchronous>, transform_indices = @transform_10, window_bounds = array<i64: 1, 256>}, {pipeline_mode = #tpu.pipeline_mode<synchronous>, transform_indices = @transform_11, window_bounds = array<i64: 256, 256>}, {pipeline_mode = #tpu.pipeline_mode<synchronous>, transform_indices = @transform_12, window_bounds = array<i64: 1, 256>}, {transform_indices = @transform_13, window_bounds = array<i64: 1>}, {transform_indices = @transform_14, window_bounds = array<i64: 16, 256>}, {transform_indices = @transform_15, window_bounds = array<i64: 16, 256>}]} {
    %c0 = arith.constant 0 : index
    %c0_0 = arith.constant 0 : index
    %0 = vector.load %arg1[%c0, %c0_0] : memref<16x256xf32, #tpu.memory_space<vmem>>, vector<16x256xf32>
    %1 = arith.truncf %0 : vector<16x256xf32> to vector<16x256xbf16>
    %c0_1 = arith.constant 0 : index
    %c0_2 = arith.constant 0 : index
    %2 = vector.load %arg2[%c0_1, %c0_2] : memref<256x256xbf16, #tpu.memory_space<vmem>>, vector<256x256xbf16>
    %cst = arith.constant dense<0.000000e+00> : vector<16x256xf32>
    %3 = tpu.matmul %1, %2, %cst {dimension_numbers = #tpu.dot_dimension_numbers<[1], [0], [0], [1], [0, 0, 1, 1], [], []>} : vector<16x256xbf16>, vector<256x256xbf16>, vector<16x256xf32> -> vector<16x256xf32>
    %c0_3 = arith.constant 0 : index
    %c0_4 = arith.constant 0 : index
    %4 = vector.load %arg3[%c0_3, %c0_4] : memref<1x256xf32, #tpu.memory_space<vmem>>, vector<1x256xf32>
    %5 = vector.broadcast %4 : vector<1x256xf32> to vector<16x256xf32>
    %6 = arith.addf %3, %5 : vector<16x256xf32>
    %7 = math.tanh %6 : vector<16x256xf32>
    %8 = arith.truncf %7 : vector<16x256xf32> to vector<16x256xbf16>
    %c0_5 = arith.constant 0 : index
    %c0_6 = arith.constant 0 : index
    %9 = vector.load %arg4[%c0_5, %c0_6] : memref<256x256xbf16, #tpu.memory_space<vmem>>, vector<256x256xbf16>
    %cst_7 = arith.constant dense<0.000000e+00> : vector<16x256xf32>
    %10 = tpu.matmul %8, %9, %cst_7 {dimension_numbers = #tpu.dot_dimension_numbers<[1], [0], [0], [1], [0, 0, 1, 1], [], []>} : vector<16x256xbf16>, vector<256x256xbf16>, vector<16x256xf32> -> vector<16x256xf32>
    %c0_8 = arith.constant 0 : index
    %c0_9 = arith.constant 0 : index
    %11 = vector.load %arg5[%c0_8, %c0_9] : memref<1x256xf32, #tpu.memory_space<vmem>>, vector<1x256xf32>
    %12 = vector.broadcast %11 : vector<1x256xf32> to vector<16x256xf32>
    %13 = arith.addf %10, %12 : vector<16x256xf32>
    %14 = math.tanh %13 : vector<16x256xf32>
    %15 = arith.truncf %14 : vector<16x256xf32> to vector<16x256xbf16>
    %c0_10 = arith.constant 0 : index
    %c0_11 = arith.constant 0 : index
    %16 = vector.load %arg6[%c0_10, %c0_11] : memref<256x256xbf16, #tpu.memory_space<vmem>>, vector<256x256xbf16>
    %cst_12 = arith.constant dense<0.000000e+00> : vector<16x256xf32>
    %17 = tpu.matmul %15, %16, %cst_12 {dimension_numbers = #tpu.dot_dimension_numbers<[1], [0], [0], [1], [0, 0, 1, 1], [], []>} : vector<16x256xbf16>, vector<256x256xbf16>, vector<16x256xf32> -> vector<16x256xf32>
    %c0_13 = arith.constant 0 : index
    %c0_14 = arith.constant 0 : index
    %18 = vector.load %arg7[%c0_13, %c0_14] : memref<1x256xf32, #tpu.memory_space<vmem>>, vector<1x256xf32>
    %19 = vector.broadcast %18 : vector<1x256xf32> to vector<16x256xf32>
    %20 = arith.addf %17, %19 : vector<16x256xf32>
    %c0_15 = arith.constant 0 : index
    %21 = memref.load %arg14[%c0_15] : memref<1xf32, #tpu.memory_space<smem>>
    %22 = vector.extract_strided_slice %20 {offsets = [0, 0], sizes = [16, 128], strides = [1, 1]} : vector<16x256xf32> to vector<16x128xf32>
    %23 = vector.extract_strided_slice %20 {offsets = [0, 128], sizes = [16, 128], strides = [1, 1]} : vector<16x256xf32> to vector<16x128xf32>
    %24 = arith.mulf %22, %22 : vector<16x128xf32>
    %25 = arith.mulf %23, %23 : vector<16x128xf32>
    %26 = arith.addf %24, %25 : vector<16x128xf32>
    %cst_16 = arith.constant 1.000000e-30 : f32
    %27 = vector.broadcast %cst_16 : f32 to vector<16x128xf32>
    %28 = arith.maximumf %26, %27 : vector<16x128xf32>
    %29 = math.rsqrt %28 : vector<16x128xf32>
    %30 = vector.broadcast %21 : f32 to vector<16x128xf32>
    %31 = arith.mulf %30, %29 : vector<16x128xf32>
    %cst_17 = arith.constant 1.000000e+00 : f32
    %32 = vector.broadcast %cst_17 : f32 to vector<16x128xf32>
    %33 = arith.subf %32, %31 : vector<16x128xf32>
    %cst_18 = arith.constant 0.000000e+00 : f32
    %34 = vector.broadcast %cst_18 : f32 to vector<16x128xf32>
    %35 = arith.maximumf %33, %34 : vector<16x128xf32>
    %36 = arith.mulf %22, %35 : vector<16x128xf32>
    %c0_19 = arith.constant 0 : index
    %c0_20 = arith.constant 0 : index
    %37 = vector.load %arg16[%c0_19, %c0_20] : memref<16x256xf32, #tpu.memory_space<vmem>>, vector<16x128xf32>
    tpu.vector_store %arg16[%c0_19, %c0_20], %36 {strides = array<i32>} : memref<16x256xf32, #tpu.memory_space<vmem>>, vector<16x128xf32>,
    %38 = arith.mulf %23, %35 : vector<16x128xf32>
    %c0_21 = arith.constant 0 : index
    %c128 = arith.constant 128 : index
    %39 = vector.load %arg16[%c0_21, %c128] : memref<16x256xf32, #tpu.memory_space<vmem>>, vector<16x128xf32>
    tpu.vector_store %arg16[%c0_21, %c128], %38 {strides = array<i32>} : memref<16x256xf32, #tpu.memory_space<vmem>>, vector<16x128xf32>,
    %c0_22 = arith.constant 0 : index
    %c0_23 = arith.constant 0 : index
    %40 = vector.load %arg16[%c0_22, %c0_23] : memref<16x256xf32, #tpu.memory_space<vmem>>, vector<16x256xf32>
    %41 = arith.truncf %40 : vector<16x256xf32> to vector<16x256xbf16>
    %c0_24 = arith.constant 0 : index
    %c0_25 = arith.constant 0 : index
    %42 = vector.load %arg8[%c0_24, %c0_25] : memref<256x256xbf16, #tpu.memory_space<vmem>>, vector<256x256xbf16>
    %cst_26 = arith.constant dense<0.000000e+00> : vector<16x256xf32>
    %43 = tpu.matmul %41, %42, %cst_26 {dimension_numbers = #tpu.dot_dimension_numbers<[1], [0], [0], [1], [0, 0, 1, 1], [], []>} : vector<16x256xbf16>, vector<256x256xbf16>, vector<16x256xf32> -> vector<16x256xf32>
    %c0_27 = arith.constant 0 : index
    %c0_28 = arith.constant 0 : index
    %44 = vector.load %arg9[%c0_27, %c0_28] : memref<1x256xf32, #tpu.memory_space<vmem>>, vector<1x256xf32>
    %45 = vector.broadcast %44 : vector<1x256xf32> to vector<16x256xf32>
    %46 = arith.addf %43, %45 : vector<16x256xf32>
    %47 = math.tanh %46 : vector<16x256xf32>
    %48 = arith.truncf %47 : vector<16x256xf32> to vector<16x256xbf16>
    %c0_29 = arith.constant 0 : index
    %c0_30 = arith.constant 0 : index
    %49 = vector.load %arg10[%c0_29, %c0_30] : memref<256x256xbf16, #tpu.memory_space<vmem>>, vector<256x256xbf16>
    %cst_31 = arith.constant dense<0.000000e+00> : vector<16x256xf32>
    %50 = tpu.matmul %48, %49, %cst_31 {dimension_numbers = #tpu.dot_dimension_numbers<[1], [0], [0], [1], [0, 0, 1, 1], [], []>} : vector<16x256xbf16>, vector<256x256xbf16>, vector<16x256xf32> -> vector<16x256xf32>
    %c0_32 = arith.constant 0 : index
    %c0_33 = arith.constant 0 : index
    %51 = vector.load %arg11[%c0_32, %c0_33] : memref<1x256xf32, #tpu.memory_space<vmem>>, vector<1x256xf32>
    %52 = vector.broadcast %51 : vector<1x256xf32> to vector<16x256xf32>
    %53 = arith.addf %50, %52 : vector<16x256xf32>
    %54 = math.tanh %53 : vector<16x256xf32>
    %55 = arith.truncf %54 : vector<16x256xf32> to vector<16x256xbf16>
    %c0_34 = arith.constant 0 : index
    %c0_35 = arith.constant 0 : index
    %56 = vector.load %arg12[%c0_34, %c0_35] : memref<256x256xbf16, #tpu.memory_space<vmem>>, vector<256x256xbf16>
    %cst_36 = arith.constant dense<0.000000e+00> : vector<16x256xf32>
    %57 = tpu.matmul %55, %56, %cst_36 {dimension_numbers = #tpu.dot_dimension_numbers<[1], [0], [0], [1], [0, 0, 1, 1], [], []>} : vector<16x256xbf16>, vector<256x256xbf16>, vector<16x256xf32> -> vector<16x256xf32>
    %c0_37 = arith.constant 0 : index
    %c0_38 = arith.constant 0 : index
    %58 = vector.load %arg13[%c0_37, %c0_38] : memref<1x256xf32, #tpu.memory_space<vmem>>, vector<1x256xf32>
    %59 = vector.broadcast %58 : vector<1x256xf32> to vector<16x256xf32>
    %60 = arith.addf %57, %59 : vector<16x256xf32>
    %c0_39 = arith.constant 0 : index
    %c0_40 = arith.constant 0 : index
    %61 = vector.load %arg15[%c0_39, %c0_40] : memref<16x256xf32, #tpu.memory_space<vmem>>, vector<16x256xf32>
    tpu.vector_store %arg15[%c0_39, %c0_40], %60 {strides = array<i32>} : memref<16x256xf32, #tpu.memory_space<vmem>>, vector<16x256xf32>,
    return
  }
  func.func @transform_0(%arg0: i32) -> (i32, i32) {
    %c0_i32 = arith.constant 0 : i32
    %c0_i32_0 = arith.constant 0 : i32
    return %arg0, %c0_i32 : i32, i32
  }
  func.func @transform_1(%arg0: i32) -> (i32, i32) {
    %c0_i32 = arith.constant 0 : i32
    %c0_i32_0 = arith.constant 0 : i32
    %c0_i32_1 = arith.constant 0 : i32
    return %c0_i32, %c0_i32_0 : i32, i32
  }
  func.func @transform_2(%arg0: i32) -> (i32, i32) {
    %c0_i32 = arith.constant 0 : i32
    %c0_i32_0 = arith.constant 0 : i32
    %c0_i32_1 = arith.constant 0 : i32
    return %c0_i32, %c0_i32_0 : i32, i32
  }
  func.func @transform_3(%arg0: i32) -> (i32, i32) {
    %c0_i32 = arith.constant 0 : i32
    %c0_i32_0 = arith.constant 0 : i32
    %c0_i32_1 = arith.constant 0 : i32
    return %c0_i32, %c0_i32_0 : i32, i32
  }
  func.func @transform_4(%arg0: i32) -> (i32, i32) {
    %c0_i32 = arith.constant 0 : i32
    %c0_i32_0 = arith.constant 0 : i32
    %c0_i32_1 = arith.constant 0 : i32
    return %c0_i32, %c0_i32_0 : i32, i32
  }
  func.func @transform_5(%arg0: i32) -> (i32, i32) {
    %c0_i32 = arith.constant 0 : i32
    %c0_i32_0 = arith.constant 0 : i32
    %c0_i32_1 = arith.constant 0 : i32
    return %c0_i32, %c0_i32_0 : i32, i32
  }
  func.func @transform_6(%arg0: i32) -> (i32, i32) {
    %c0_i32 = arith.constant 0 : i32
    %c0_i32_0 = arith.constant 0 : i32
    %c0_i32_1 = arith.constant 0 : i32
    return %c0_i32, %c0_i32_0 : i32, i32
  }
  func.func @transform_7(%arg0: i32) -> (i32, i32) {
    %c0_i32 = arith.constant 0 : i32
    %c0_i32_0 = arith.constant 0 : i32
    %c0_i32_1 = arith.constant 0 : i32
    return %c0_i32, %c0_i32_0 : i32, i32
  }
  func.func @transform_8(%arg0: i32) -> (i32, i32) {
    %c0_i32 = arith.constant 0 : i32
    %c0_i32_0 = arith.constant 0 : i32
    %c0_i32_1 = arith.constant 0 : i32
    return %c0_i32, %c0_i32_0 : i32, i32
  }
  func.func @transform_9(%arg0: i32) -> (i32, i32) {
    %c0_i32 = arith.constant 0 : i32
    %c0_i32_0 = arith.constant 0 : i32
    %c0_i32_1 = arith.constant 0 : i32
    return %c0_i32, %c0_i32_0 : i32, i32
  }
  func.func @transform_10(%arg0: i32) -> (i32, i32) {
    %c0_i32 = arith.constant 0 : i32
    %c0_i32_0 = arith.constant 0 : i32
    %c0_i32_1 = arith.constant 0 : i32
    return %c0_i32, %c0_i32_0 : i32, i32
  }
  func.func @transform_11(%arg0: i32) -> (i32, i32) {
    %c0_i32 = arith.constant 0 : i32
    %c0_i32_0 = arith.constant 0 : i32
    %c0_i32_1 = arith.constant 0 : i32
    return %c0_i32, %c0_i32_0 : i32, i32
  }
  func.func @transform_12(%arg0: i32) -> (i32, i32) {
    %c0_i32 = arith.constant 0 : i32
    %c0_i32_0 = arith.constant 0 : i32
    %c0_i32_1 = arith.constant 0 : i32
    return %c0_i32, %c0_i32_0 : i32, i32
  }
  func.func @transform_13(%arg0: i32) -> i32 {
    %c0_i32 = arith.constant 0 : i32
    %c0_i32_0 = arith.constant 0 : i32
    return %c0_i32 : i32
  }
  func.func @transform_14(%arg0: i32) -> (i32, i32) {
    %c0_i32 = arith.constant 0 : i32
    %c0_i32_0 = arith.constant 0 : i32
    return %arg0, %c0_i32 : i32, i32
  }
  func.func @transform_15(%arg0: i32) -> (i32, i32) {
    %c0_i32 = arith.constant 0 : i32
    %c0_i32_0 = arith.constant 0 : i32
    return %arg0, %c0_i32 : i32, i32
  }
}

</mosaic_0001>

<bundles_post_ra>
// kernel: tpu_custom_call.1
= control target key start
LH: loop header
LB: loop body
LE: loop exit
PB: predicated region body
PF: predicated region fallthrough
CT: control target
= control target key end

     0   :  { %22 = vsyncpa [#allocation4], 0  ;;  %s2636_s0 = inlined_call_operand.hbm [shape: f32[16,256], index: 0, kind: input, shape index: {}]   ;;  %s2637_s1 = inlined_call_operand.hbm [shape: bf16[256,256], index: 1, kind: input, shape index: {}]   ;;  %s2638_s2 = inlined_call_operand.vmem [shape: f32[1,256], index: 2, kind: input, shape index: {}]   ;;  %s2639_s3 = inlined_call_operand.hbm [shape: bf16[256,256], index: 3, kind: input, shape index: {}]   ;;  %s2640_s4 = inlined_call_operand.vmem [shape: f32[1,256], index: 4, kind: input, shape index: {}]   ;;  %s2641_s5 = inlined_call_operand.hbm [shape: bf16[256,256], index: 5, kind: input, shape index: {}]   ;;  %s2642_s6 = inlined_call_operand.vmem [shape: f32[1,256], index: 6, kind: input, shape index: {}]   ;;  %s2643_s7 = inlined_call_operand.hbm [shape: bf16[256,256], index: 7, kind: input, shape index: {}]   ;;  %s2644_s8 = inlined_call_operand.vmem [shape: f32[1,256], index: 8, kind: input, shape index: {}]   ;;  %s2645_s9 = inlined_call_operand.hbm [shape: bf16[256,256], index: 9, kind: input, shape index: {}]   ;;  %s2646_s10 = inlined_call_operand.vmem [shape: f32[1,256], index: 10, kind: input, shape index: {}]   ;;  %s2647_s11 = inlined_call_operand.hbm [shape: bf16[256,256], index: 11, kind: input, shape index: {}]   ;;  %s2648_s12 = inlined_call_operand.vmem [shape: f32[1,256], index: 12, kind: input, shape index: {}]   ;;  %s2649_s13 = inlined_call_operand.<no memory space> [shape: f32[1], index: 13, kind: input, shape index: {}]   ;;  %s2650_s14 = inlined_call_operand.hbm [shape: f32[16,256], index: 14, kind: output, shape index: {0}]   ;;  %s2651_s15 = inlined_call_operand.hbm [shape: f32[16,256], index: 15, kind: output, shape index: {1}]  }
   0x1   :  { %23 = vsyncpa [#allocation7], 0 }
   0x2   :  { %24 = vsyncpa [#allocation10], 0 }
   0x3   :  { %25 = vsyncpa [#allocation13], 0 }
   0x4   :  { %26 = vsyncpa [#allocation5], 0 }
   0x5   :  { %27 = vsyncpa [#allocation17], 0  ;;  %s2452_s18 = smov [#allocation6]  }
   0x6   :  { %s45_s19 = sshll.u32 %s2452_s18, 4  ;;  %s46_s19 = int_to_ptr.vmem [resolvable:$true] %s45_s19 }
   0x7   :  { %s2268_s20 = scalar_lea.vmem %s46_s19, 4096  ;;  %p2273_p1 = scmp.lt.s32.totalorder %s46_s19, %s46_s19 }
   0x8   :  { %p2269_p0 = scmp.ne.s32.totalorder %s46_s19, %s2268_s20  ;;  %p2274_p2 = scmp.lt.s32.totalorder %s2268_s20, %s2268_s20 }
   0xa   :  { %p2275_p3 = por %p2274_p2, %p2273_p1 }
   0xc   :  { %p2276_p4 = pnand %p2275_p3, %p2269_p0 }
   0xe   :  { %2279 = shalt.err (!%p2276_p4)
}
   0xf   :  { %s2453_s21 = smov 128   ;;  %s2454_s22 = smov 8  }
  0x10   :  { %51 = dma.hbm_to_vmem [thread:$0]  %s2637_s1, 4096, %s46_s19, [#allocation7], %s2453_s21, %s2453_s21, %s2454_s22  }
  0x11   :  { %s2455_s25 = smov [#allocation9]   ;;  %s2456_s27 = smov [#allocation12]  }
  0x12   :  { %s73_s26 = sshll.u32 %s2455_s25, 4  ;;  %s101_s28 = sshll.u32 %s2456_s27, 4  ;;  %s74_s26 = int_to_ptr.vmem [resolvable:$true] %s73_s26  ;;  %s102_s28 = int_to_ptr.vmem [resolvable:$true] %s101_s28 }
  0x13   :  { %s2288_s29 = scalar_lea.vmem %s74_s26, 4096  ;;  %p2293_p6 = scmp.lt.s32.totalorder %s74_s26, %s74_s26 }
  0x14   :  { %p2289_p5 = scmp.ne.s32.totalorder %s74_s26, %s2288_s29  ;;  %p2294_p7 = scmp.lt.s32.totalorder %s2288_s29, %s2288_s29 }
  0x16   :  { %p2295_p8 = por %p2294_p7, %p2293_p6 }
  0x18   :  { %p2296_p9 = pnand %p2295_p8, %p2289_p5 }
  0x1a   :  { %2299 = shalt.err (!%p2296_p9)
}
  0x1b   :  { %79 = dma.hbm_to_vmem [thread:$0]  %s2641_s5, 4096, %s74_s26, [#allocation10], %s2453_s21, %s2453_s21, %s2454_s22  }
  0x1c   :  { %s2308_s1 = scalar_lea.vmem %s102_s28, 4096  ;;  %p2313_p11 = scmp.lt.s32.totalorder %s102_s28, %s102_s28 }
  0x1d   :  { %p2309_p10 = scmp.ne.s32.totalorder %s102_s28, %s2308_s1  ;;  %p2314_p12 = scmp.lt.s32.totalorder %s2308_s1, %s2308_s1 }
  0x1f   :  { %p2315_p13 = por %p2314_p12, %p2313_p11 }
  0x21   :  { %p2316_p0 = pnand %p2315_p13, %p2309_p10 }
  0x23   :  { %2319 = shalt.err (!%p2316_p0)
}
  0x24   :  { %107 = dma.hbm_to_vmem [thread:$0]  %s2645_s9, 4096, %s102_s28, [#allocation13], %s2453_s21, %s2453_s21, %s2454_s22  }
  0x25   :  { %s2457_s19 = smov [#allocation3]  }
  0x26   :  { %s33_s20 = sshll.u32 %s2457_s19, 4  ;;  %s34_s20 = int_to_ptr.vmem [resolvable:$true] %s33_s20 }
  0x27   :  { %s2328_s23 = scalar_lea.vmem %s34_s20, 512  ;;  %p2333_p2 = scmp.lt.s32.totalorder %s34_s20, %s34_s20 }
  0x28   :  { %p2329_p1 = scmp.ne.s32.totalorder %s34_s20, %s2328_s23  ;;  %p2334_p3 = scmp.lt.s32.totalorder %s2328_s23, %s2328_s23 }
  0x2a   :  { %p2335_p4 = por %p2334_p3, %p2333_p2 }
  0x2c   :  { %p2336_p5 = pnand %p2335_p4, %p2329_p1 }
  0x2e   :  { %2339 = shalt.err (!%p2336_p5)
}
  0x2f   :  { %s2458_s5 = smov 256   ;;  %s2459_s24 = smov 16  }
  0x30   :  { %39 = dma.hbm_to_vmem [thread:$0]  %s2636_s0, 512, %s34_s20, [#allocation4], %s2458_s5, %s2458_s5, %s2459_s24  }
  0x31   :  { %s2460_s9 = smov [#allocation8]   ;;  %s2461_s28 = smov [#allocation11]  }
  0x32   :  { %s59_s27 = sshll.u32 %s2460_s9, 4  ;;  %s87_s29 = sshll.u32 %s2461_s28, 4  ;;  %s60_s27 = int_to_ptr.vmem [resolvable:$true] %s59_s27  ;;  %s88_s29 = int_to_ptr.vmem [resolvable:$true] %s87_s29 }
  0x33   :  { %s2348_s30 = scalar_lea.vmem %s60_s27, 4096  ;;  %p2353_p7 = scmp.lt.s32.totalorder %s60_s27, %s60_s27 }
  0x34   :  { %p2349_p6 = scmp.ne.s32.totalorder %s60_s27, %s2348_s30  ;;  %p2354_p8 = scmp.lt.s32.totalorder %s2348_s30, %s2348_s30 }
  0x36   :  { %p2355_p9 = por %p2354_p8, %p2353_p7 }
  0x38   :  { %p2356_p10 = pnand %p2355_p9, %p2349_p6 }
  0x3a   :  { %2359 = shalt.err (!%p2356_p10)
}
  0x3b   :  { %65 = dma.hbm_to_vmem [thread:$0]  %s2639_s3, 4096, %s60_s27, [#allocation7], %s2453_s21, %s2453_s21, %s2454_s22  }
  0x3c   :  { %s2368_s0 = scalar_lea.vmem %s88_s29, 4096  ;;  %p2373_p12 = scmp.lt.s32.totalorder %s88_s29, %s88_s29 }
  0x3d   :  { %p2369_p11 = scmp.ne.s32.totalorder %s88_s29, %s2368_s0  ;;  %p2374_p13 = scmp.lt.s32.totalorder %s2368_s0, %s2368_s0 }
  0x3f   :  { %p2375_p0 = por %p2374_p13, %p2373_p12 }
  0x41   :  { %p2376_p1 = pnand %p2375_p0, %p2369_p11 }
  0x43   :  { %2379 = shalt.err (!%p2376_p1)
}
  0x44   :  { %93 = dma.hbm_to_vmem [thread:$0]  %s2643_s7, 4096, %s88_s29, [#allocation10], %s2453_s21, %s2453_s21, %s2454_s22  }
  0x45   :  { %s2462_s19 = smov [#allocation14]  }
  0x46   :  { %s115_s20 = sshll.u32 %s2462_s19, 4  ;;  %s116_s20 = int_to_ptr.vmem [resolvable:$true] %s115_s20 }
  0x47   :  { %s2388_s23 = scalar_lea.vmem %s116_s20, 4096  ;;  %p2393_p3 = scmp.lt.s32.totalorder %s116_s20, %s116_s20 }
  0x48   :  { %p2389_p2 = scmp.ne.s32.totalorder %s116_s20, %s2388_s23  ;;  %p2394_p4 = scmp.lt.s32.totalorder %s2388_s23, %s2388_s23 }
  0x4a   :  { %p2395_p5 = por %p2394_p4, %p2393_p3 }
  0x4c   :  { %p2396_p6 = pnand %p2395_p5, %p2389_p2 }
  0x4e   :  { %2399 = shalt.err (!%p2396_p6)
}
  0x4f   :  { %121 = dma.hbm_to_vmem [thread:$0]  %s2647_s11, 4096, %s116_s20, [#allocation13], %s2453_s21, %s2453_s21, %s2454_s22  }
  0x50   :  { %2440 = dma.done.wait [#allocation4], 512  }
  0x51   :  { %2441 = vsyncadd [#allocation4], 4294966784 }
  0x52   :  { %2442 = dma.done.wait [#allocation7], 8192  }
  0x53   :  { %2443 = vsyncadd [#allocation7], 4294959104 }
  0x54   :  { %2444 = dma.done.wait [#allocation10], 8192  }
  0x55   :  { %2445 = vsyncadd [#allocation10], 4294959104 }
  0x56   :  { %2446 = dma.done.wait [#allocation13], 8192  }
  0x57   :  { %2447 = vsyncadd [#allocation13], 4294959104  ;;  %v1936_v0 = vld [vmem:[#allocation6 + $0x74] ss:$8 sps:$4 sm:$0xff]   ;;  %v1938_v1 = vld [vmem:[#allocation6 + $0x70] ss:$8 sps:$4 sm:$0xff]  }
  0x58   :  { %357 = vmatprep.subr.bf16.mxu0 %v1936_v0  ;;  %v1939_v2 = vld [vmem:[#allocation6 + $0x64] ss:$8 sps:$4 sm:$0xff]   ;;  %v1941_v3 = vld [vmem:[#allocation6 + $0x60] ss:$8 sps:$4 sm:$0xff]   ;;  %v1942_v4 = vld [vmem:[#allocation6 + $0x54] ss:$8 sps:$4 sm:$0xff]  }
  0x59   :  { %358 = vmatpush1.bf16.msra.mxu0 %v1938_v1  ;;  %v1944_v5 = vld [vmem:[#allocation6 + $0x50] ss:$8 sps:$4 sm:$0xff]   ;;  %v1945_v6 = vld [vmem:[#allocation6 + $0x44] ss:$8 sps:$4 sm:$0xff]   ;;  %v1947_v7 = vld [vmem:[#allocation6 + $0x40] ss:$8 sps:$4 sm:$0xff]  }
  0x5a   :  { %359 = vmatprep.subr.bf16.mxu0 %v1939_v2  ;;  %v1948_v8 = vld [vmem:[#allocation6 + $0x34] ss:$8 sps:$4 sm:$0xff]   ;;  %v1950_v9 = vld [vmem:[#allocation6 + $0x30] ss:$8 sps:$4 sm:$0xff]   ;;  %v1951_v10 = vld [vmem:[#allocation6 + $0x24] ss:$8 sps:$4 sm:$0xff]  }
  0x5b   :  { %v1953_v11 = vld [vmem:[#allocation6 + $0x20] ss:$8 sps:$4 sm:$0xff]   ;;  %v1954_v12 = vld [vmem:[#allocation6 + $0x14] ss:$8 sps:$4 sm:$0xff]   ;;  %v1956_v15 = vld [vmem:[#allocation6 + $0x10] ss:$8 sps:$4 sm:$0xff]  }
  0x5c   :  { %v148_v13 = vld [vmem:[#allocation3 + $0x8] sm:$0xff]  ;;  %v150_v14 = vld [vmem:[#allocation3 + $0x18] sm:$0xff]  ;;  %v147_v55 = vld [vmem:[#allocation3] sm:$0xff] }
  0x5d   :  { %360 = vmatpush1.bf16.msra.mxu0 %v1941_v3  ;;  %v1957_v16 = vld [vmem:[#allocation6 + $0x4] ss:$8 sps:$4 sm:$0xff]   ;;  %v152_v17 = vpack.c.bf16 %v150_v14, %v148_v13  ;;  %v1984_v18 = vld [vmem:[#allocation8 + $0x74] ss:$8 sps:$4 sm:$0xff]   ;;  %v1986_v19 = vld [vmem:[#allocation8 + $0x70] ss:$8 sps:$4 sm:$0xff]  }
  0x5e   :  { %361 = vmatprep.subr.bf16.mxu0 %v1942_v4  ;;  %v1987_v20 = vld [vmem:[#allocation8 + $0x64] ss:$8 sps:$4 sm:$0xff]   ;;  %610 = vmatprep.subr.bf16.mxu1 %v1984_v18  ;;  %v1989_v21 = vld [vmem:[#allocation8 + $0x60] ss:$8 sps:$4 sm:$0xff]   ;;  %v1990_v23 = vld [vmem:[#allocation8 + $0x54] ss:$8 sps:$4 sm:$0xff]  }
  0x5f   :  { %389 = vmatprep.mubr.bf16.mxu0 %v152_v17  ;;  %611 = vmatpush1.bf16.msra.mxu1 %v1986_v19  ;;  %v1959_v22 = vld [vmem:[#allocation6] ss:$8 sps:$4 sm:$0xff]   ;;  %v1960_v24 = vld [vmem:[#allocation6 + $0xf4] ss:$8 sps:$4 sm:$0xff]   ;;  %v1992_v25 = vld [vmem:[#allocation8 + $0x50] ss:$8 sps:$4 sm:$0xff]  }
  0x60   :  { %612 = vmatprep.subr.bf16.mxu1 %v1987_v20  ;;  %v1962_v26 = vld [vmem:[#allocation6 + $0xf0] ss:$8 sps:$4 sm:$0xff]   ;;  %v1993_v27 = vld [vmem:[#allocation8 + $0x44] ss:$8 sps:$4 sm:$0xff]   ;;  %v1965_v29 = vld [vmem:[#allocation6 + $0xe0] ss:$8 sps:$4 sm:$0xff]  }
  0x61   :  { %362 = vmatpush1.bf16.msra.mxu0 %v1944_v5  ;;  %v1963_v28 = vld [vmem:[#allocation6 + $0xe4] ss:$8 sps:$4 sm:$0xff]   ;;  %v1995_v30 = vld [vmem:[#allocation8 + $0x40] ss:$8 sps:$4 sm:$0xff]   ;;  %v1966_v31 = vld [vmem:[#allocation6 + $0xd4] ss:$8 sps:$4 sm:$0xff]  }
  0x62   :  { %363 = vmatprep.subr.bf16.mxu0 %v1945_v6  ;;  %v1996_v32 = vld [vmem:[#allocation8 + $0x34] ss:$8 sps:$4 sm:$0xff]   ;;  %v1998_v33 = vld [vmem:[#allocation8 + $0x30] ss:$8 sps:$4 sm:$0xff]   ;;  %v1999_v35 = vld [vmem:[#allocation8 + $0x24] ss:$8 sps:$4 sm:$0xff]  }
  0x63   :  { %613 = vmatpush1.bf16.msra.mxu1 %v1989_v21  ;;  %v1968_v34 = vld [vmem:[#allocation6 + $0xd0] ss:$8 sps:$4 sm:$0xff]   ;;  %v1969_v36 = vld [vmem:[#allocation6 + $0xc4] ss:$8 sps:$4 sm:$0xff]   ;;  %v2001_v37 = vld [vmem:[#allocation8 + $0x20] ss:$8 sps:$4 sm:$0xff]  }
  0x64   :  { %614 = vmatprep.subr.bf16.mxu1 %v1990_v23  ;;  %v1971_v38 = vld [vmem:[#allocation6 + $0xc0] ss:$8 sps:$4 sm:$0xff]   ;;  %v2002_v39 = vld [vmem:[#allocation8 + $0x14] ss:$8 sps:$4 sm:$0xff]   ;;  %v2004_v41 = vld [vmem:[#allocation8 + $0x10] ss:$8 sps:$4 sm:$0xff]  }
  0x65   :  { %364 = vmatpush1.bf16.msra.mxu0 %v1947_v7  ;;  %v1972_v40 = vld [vmem:[#allocation6 + $0xb4] ss:$8 sps:$4 sm:$0xff]   ;;  %v1974_v42 = vld [vmem:[#allocation6 + $0xb0] ss:$8 sps:$4 sm:$0xff]   ;;  %v2005_v43 = vld [vmem:[#allocation8 + $0x4] ss:$8 sps:$4 sm:$0xff]  }
  0x66   :  { %365 = vmatprep.subr.bf16.mxu0 %v1948_v8  ;;  %v1975_v44 = vld [vmem:[#allocation6 + $0xa4] ss:$8 sps:$4 sm:$0xff]   ;;  %v2007_v45 = vld [vmem:[#allocation8] ss:$8 sps:$4 sm:$0xff]   ;;  %v2008_v47 = vld [vmem:[#allocation8 + $0xf4] ss:$8 sps:$4 sm:$0xff]  }
  0x67   :  { %615 = vmatpush1.bf16.msra.mxu1 %v1992_v25  ;;  %v1977_v46 = vld [vmem:[#allocation6 + $0xa0] ss:$8 sps:$4 sm:$0xff]   ;;  %v1978_v48 = vld [vmem:[#allocation6 + $0x94] ss:$8 sps:$4 sm:$0xff]   ;;  %v2010_v49 = vld [vmem:[#allocation8 + $0xf0] ss:$8 sps:$4 sm:$0xff]  }
  0x68   :  { %616 = vmatprep.subr.bf16.mxu1 %v1993_v27  ;;  %v1980_v50 = vld [vmem:[#allocation6 + $0x90] ss:$8 sps:$4 sm:$0xff]   ;;  %v2011_v51 = vld [vmem:[#allocation8 + $0xe4] ss:$8 sps:$4 sm:$0xff]   ;;  %v2013_v53 = vld [vmem:[#allocation8 + $0xe0] ss:$8 sps:$4 sm:$0xff]  }
  0x69   :  { %366 = vmatpush1.bf16.msra.mxu0 %v1950_v9  ;;  %v1981_v52 = vld [vmem:[#allocation6 + $0x84] ss:$8 sps:$4 sm:$0xff]   ;;  %v1983_v54 = vld [vmem:[#allocation6 + $0x80] ss:$8 sps:$4 sm:$0xff]   ;;  %v149_v56 = vld [vmem:[#allocation3 + $0x10] sm:$0xff] }
  0x6a   :  { %367 = vmatprep.subr.bf16.mxu0 %v1951_v10  ;;  %v151_v57 = vpack.c.bf16 %v149_v56, %v147_v55  ;;  %v2014_v58 = vld [vmem:[#allocation8 + $0xd4] ss:$8 sps:$4 sm:$0xff]   ;;  %v2016_v59 = vld [vmem:[#allocation8 + $0xd0] ss:$8 sps:$4 sm:$0xff]   ;;  %v2017_v60 = vld [vmem:[#allocation8 + $0xc4] ss:$8 sps:$4 sm:$0xff]  }
  0x6b   :  { %617 = vmatpush1.bf16.msra.mxu1 %v1995_v30  ;;  %v2019_v61 = vld [vmem:[#allocation8 + $0xc0] ss:$8 sps:$4 sm:$0xff]   ;;  %v2020_v62 = vld [vmem:[#allocation8 + $0xb4] ss:$8 sps:$4 sm:$0xff]   ;;  %v2022_v63 = vld [vmem:[#allocation8 + $0xb0] ss:$8 sps:$4 sm:$0xff]  }
  0x6c   :  { %618 = vmatprep.subr.bf16.mxu1 %v1996_v32  ;;  %v2023_v0 = vld [vmem:[#allocation8 + $0xa4] ss:$8 sps:$4 sm:$0xff]   ;;  %v2025_v1 = vld [vmem:[#allocation8 + $0xa0] ss:$8 sps:$4 sm:$0xff]   ;;  %v2026_v2 = vld [vmem:[#allocation8 + $0x94] ss:$8 sps:$4 sm:$0xff]  }
  0x6d   :  { %368 = vmatpush1.bf16.msra.mxu0 %v1953_v11  ;;  %v2028_v3 = vld [vmem:[#allocation8 + $0x90] ss:$8 sps:$4 sm:$0xff]   ;;  %v2029_v4 = vld [vmem:[#allocation8 + $0x84] ss:$8 sps:$4 sm:$0xff]   ;;  %v2031_v5 = vld [vmem:[#allocation8 + $0x80] ss:$8 sps:$4 sm:$0xff]  }
  0x6e   :  { %369 = vmatprep.subr.bf16.mxu0 %v1954_v12  ;;  %v2032_v6 = vld [vmem:[#allocation9 + $0x70] ss:$8 sps:$4 sm:$0xff]   ;;  %v2034_v7 = vld [vmem:[#allocation9 + $0x74] ss:$8 sps:$4 sm:$0xff]   ;;  %v2037_v8 = vld [vmem:[#allocation9 + $0x64] ss:$8 sps:$4 sm:$0xff]  }
  0x6f   :  { %619 = vmatpush1.bf16.msra.mxu1 %v1998_v33  ;;  %v2035_v9 = vld [vmem:[#allocation9 + $0x60] ss:$8 sps:$4 sm:$0xff]   ;;  %v2040_v10 = vld [vmem:[#allocation9 + $0x54] ss:$8 sps:$4 sm:$0xff]   ;;  %v2038_v11 = vld [vmem:[#allocation9 + $0x50] ss:$8 sps:$4 sm:$0xff]  }
  0x70   :  { %620 = vmatprep.subr.bf16.mxu1 %v1999_v35  ;;  %v2043_v12 = vld [vmem:[#allocation9 + $0x44] ss:$8 sps:$4 sm:$0xff]   ;;  %v2041_v13 = vld [vmem:[#allocation9 + $0x40] ss:$8 sps:$4 sm:$0xff]   ;;  %v2046_v14 = vld [vmem:[#allocation9 + $0x34] ss:$8 sps:$4 sm:$0xff]  }
  0x71   :  { %370 = vmatpush1.bf16.msra.mxu0 %v1956_v15  ;;  %v2044_v15 = vld [vmem:[#allocation9 + $0x30] ss:$8 sps:$4 sm:$0xff]   ;;  %v2047_v17 = vld [vmem:[#allocation9 + $0x20] ss:$8 sps:$4 sm:$0xff]   ;;  %v2052_v18 = vld [vmem:[#allocation9 + $0x14] ss:$8 sps:$4 sm:$0xff]  }
  0x72   :  { %371 = vmatprep.subr.bf16.mxu0 %v1957_v16  ;;  %v2049_v16 = vld [vmem:[#allocation9 + $0x24] ss:$8 sps:$4 sm:$0xff]   ;;  %v2050_v19 = vld [vmem:[#allocation9 + $0x10] ss:$8 sps:$4 sm:$0xff]   ;;  %v2053_v21 = vld [vmem:[#allocation9] ss:$8 sps:$4 sm:$0xff]  }
  0x73   :  { %621 = vmatpush1.bf16.msra.mxu1 %v2001_v37  ;;  %v2055_v20 = vld [vmem:[#allocation9 + $0x4] ss:$8 sps:$4 sm:$0xff]   ;;  %v2056_v23 = vld [vmem:[#allocation9 + $0xf0] ss:$8 sps:$4 sm:$0xff]   ;;  %v2059_v25 = vld [vmem:[#allocation9 + $0xe0] ss:$8 sps:$4 sm:$0xff]  }
  0x74   :  { %622 = vmatprep.subr.bf16.mxu1 %v2002_v39  ;;  %v2076_v55 = vld [vmem:[#allocation9 + $0x94] ss:$8 sps:$4 sm:$0xff]   ;;  %v2074_v56 = vld [vmem:[#allocation9 + $0x90] ss:$8 sps:$4 sm:$0xff]  }
  0x75   :  { %372 = vmatpush1.bf16.msra.mxu0 %v1959_v22  ;;  %v2058_v22 = vld [vmem:[#allocation9 + $0xf4] ss:$8 sps:$4 sm:$0xff]  }
  0x76   :  { %373 = vmatprep.subr.bf16.mxu0 %v1960_v24  ;;  %v2061_v24 = vld [vmem:[#allocation9 + $0xe4] ss:$8 sps:$4 sm:$0xff]  }
  0x77   :  { %623 = vmatpush1.bf16.msra.mxu1 %v2004_v41 }
  0x78   :  { %624 = vmatprep.subr.bf16.mxu1 %v2005_v43 }
  0x79   :  { %374 = vmatpush2.bf16.msra.mxu0 %v1962_v26  ;;  %v187_v26 = vlaneseq }
  0x7a   :  { %375 = vmatprep.subr.bf16.mxu0 %v1963_v28 }
  0x7b   :  { %625 = vmatpush1.bf16.msra.mxu1 %v2007_v45  ;;  %v188_v27 = vshrl.u32 %v187_v26, 7  ;;  %v2103_v26 = vld [vmem:[#allocation11 + $0x4] ss:$8 sps:$4 sm:$0xff]  }
  0x7c   :  { %626 = vmatprep.subr.bf16.mxu1 %v2008_v47  ;;  %v2064_v47 = vld [vmem:[#allocation9 + $0xd4] ss:$8 sps:$4 sm:$0xff]  }
  0x7d   :  { %376 = vmatpush2.bf16.msra.mxu0 %v1965_v29  ;;  %v2587_v28 = vsub.s32 1, %v188_v27  ;;  %v185_v29 = vld [vmem:[%s2638_s2] sm:$0x3]  ;;  %v2592_v30 = vsub.s32 0, %v188_v27 }
  0x7e   :  { %377 = vmatprep.subr.bf16.mxu0 %v1966_v31  ;;  %v2101_v27 = vld [vmem:[#allocation11] ss:$8 sps:$4 sm:$0xff]  }
  0x7f   :  { %627 = vmatpush2.bf16.msra.mxu1 %v2010_v49  ;;  %v194_v31 = vrot.slane %v185_v29, %v2587_v28  ;;  %v190_v33 = vrot.slane %v185_v29, %v2592_v30  ;;  %v2067_v49 = vld [vmem:[#allocation9 + $0xc4] ss:$8 sps:$4 sm:$0xff]   ;;  %v2106_v29 = vld [vmem:[#allocation11 + $0xf4] ss:$8 sps:$4 sm:$0xff]  }
  0x80   :  { %628 = vmatprep.subr.bf16.mxu1 %v2011_v51  ;;  %v2070_v51 = vld [vmem:[#allocation9 + $0xb4] ss:$8 sps:$4 sm:$0xff]  }
  0x81   :  { %378 = vmatpush2.bf16.msra.mxu0 %v1968_v34 }
  0x82   :  { %379 = vmatprep.subr.bf16.mxu0 %v1969_v36 }
  0x83   :  { %629 = vmatpush2.bf16.msra.mxu1 %v2013_v53  ;;  %v2073_v53 = vld [vmem:[#allocation9 + $0xa4] ss:$8 sps:$4 sm:$0xff]  }
  0x84   :  { %630 = vmatprep.subr.bf16.mxu1 %v2014_v58  ;;  %v2077_v58 = vld [vmem:[#allocation9 + $0x80] ss:$8 sps:$4 sm:$0xff]  }
  0x85   :  { %380 = vmatpush2.bf16.msra.mxu0 %v1971_v38 }
  0x86   :  { %381 = vmatprep.subr.bf16.mxu0 %v1972_v40 }
  0x87   :  { %631 = vmatpush2.bf16.msra.mxu1 %v2016_v59  ;;  %v2080_v59 = vld [vmem:[#allocation11 + $0x70] ss:$8 sps:$4 sm:$0xff]  }
  0x88   :  { %632 = vmatprep.subr.bf16.mxu1 %v2017_v60  ;;  %v2082_v60 = vld [vmem:[#allocation11 + $0x74] ss:$8 sps:$4 sm:$0xff]  }
  0x89   :  { %382 = vmatpush2.bf16.msra.mxu0 %v1974_v42 }
  0x8a   :  { %383 = vmatprep.subr.bf16.mxu0 %v1975_v44 }
  0x8b   :  { %633 = vmatpush2.bf16.msra.mxu1 %v2019_v61  ;;  %v2085_v61 = vld [vmem:[#allocation11 + $0x64] ss:$8 sps:$4 sm:$0xff]  }
  0x8c   :  { %634 = vmatprep.subr.bf16.mxu1 %v2020_v62  ;;  %v2083_v62 = vld [vmem:[#allocation11 + $0x60] ss:$8 sps:$4 sm:$0xff]  }
  0x8d   :  { %384 = vmatpush2.bf16.msra.mxu0 %v1977_v46 }
  0x8e   :  { %385 = vmatprep.subr.bf16.mxu0 %v1978_v48  ;;  %v2062_v48 = vld [vmem:[#allocation9 + $0xd0] ss:$8 sps:$4 sm:$0xff]  }
  0x8f   :  { %635 = vmatpush2.bf16.msra.mxu1 %v2022_v63  ;;  %v2088_v63 = vld [vmem:[#allocation11 + $0x54] ss:$8 sps:$4 sm:$0xff]  }
  0x90   :  { %636 = vmatprep.subr.bf16.mxu1 %v2023_v0  ;;  %v2086_v0 = vld [vmem:[#allocation11 + $0x50] ss:$8 sps:$4 sm:$0xff]  }
  0x91   :  { %386 = vmatpush2.bf16.msra.mxu0 %v1980_v50  ;;  %v2065_v50 = vld [vmem:[#allocation9 + $0xc0] ss:$8 sps:$4 sm:$0xff]  }
  0x92   :  { %387 = vmatprep.subr.bf16.mxu0 %v1981_v52  ;;  %v2068_v52 = vld [vmem:[#allocation9 + $0xb0] ss:$8 sps:$4 sm:$0xff]  }
  0x93   :  { %637 = vmatpush2.bf16.msra.mxu1 %v2025_v1  ;;  %v2091_v1 = vld [vmem:[#allocation11 + $0x44] ss:$8 sps:$4 sm:$0xff]  }
  0x94   :  { %638 = vmatprep.subr.bf16.mxu1 %v2026_v2  ;;  %v2089_v2 = vld [vmem:[#allocation11 + $0x40] ss:$8 sps:$4 sm:$0xff]  }
  0x95   :  { %388 = vmatpush2.bf16.msra.mxu0 %v1983_v54  ;;  %v2071_v54 = vld [vmem:[#allocation9 + $0xa0] ss:$8 sps:$4 sm:$0xff]  }
  0x96   :  { %863 = vmatprep.subr.bf16.mxu0 %v2034_v7 }
  0x97   :  { %639 = vmatpush2.bf16.msra.mxu1 %v2028_v3  ;;  %v438_v3 = vld [vmem:[%s2640_s4] sm:$0x3] }
  0x98   :  { %390 = vmatmul.mubr.bf16.vlgmr.msra.gmra.mxu0 %v151_v57  ;;  %640 = vmatprep.subr.bf16.mxu1 %v2029_v4  ;;  %v2079_v57 = vld [vmem:[#allocation9 + $0x84] ss:$8 sps:$4 sm:$0xff]   ;;  %v447_v4 = vrot.slane %v438_v3, %v2587_v28 }
  0x99   :  { %864 = vmatpush1.bf16.msra.mxu0 %v2032_v6  ;;  %v443_v6 = vrot.slane %v438_v3, %v2592_v30 }
  0x9a   :  { %865 = vmatprep.subr.bf16.mxu0 %v2037_v8 }
  0x9b   :  { %641 = vmatpush2.bf16.msra.mxu1 %v2031_v5 }
  0x9c   :  { %1142 = vmatprep.subr.bf16.mxu1 %v2082_v60  ;;  %v2151_v60 = vld [vmem:[#allocation12 + $0x4] ss:$8 sps:$4 sm:$0xff]  }
  0x9d   :  { %866 = vmatpush1.bf16.msra.mxu0 %v2035_v9 }
  0x9e   :  { %867 = vmatprep.subr.bf16.mxu0 %v2040_v10 }
  0xa1   :  { %868 = vmatpush1.bf16.msra.mxu0 %v2038_v11 }
  0xa2   :  { %869 = vmatprep.subr.bf16.mxu0 %v2043_v12 }
  0xa5   :  { %870 = vmatpush1.bf16.msra.mxu0 %v2041_v13 }
  0xa6   :  { %871 = vmatprep.subr.bf16.mxu0 %v2046_v14 }
  0xa9   :  { %872 = vmatpush1.bf16.msra.mxu0 %v2044_v15 }
  0xaa   :  { %873 = vmatprep.subr.bf16.mxu0 %v2049_v16 }
  0xad   :  { %874 = vmatpush1.bf16.msra.mxu0 %v2047_v17 }
  0xae   :  { %875 = vmatprep.subr.bf16.mxu0 %v2052_v18 }
  0xb1   :  { %876 = vmatpush1.bf16.msra.mxu0 %v2050_v19 }
  0xb2   :  { %877 = vmatprep.subr.bf16.mxu0 %v2055_v20  ;;  %v2094_v20 = vld [vmem:[#allocation11 + $0x34] ss:$8 sps:$4 sm:$0xff]  }
  0xb5   :  { %878 = vmatpush1.bf16.msra.mxu0 %v2053_v21  ;;  %v2092_v21 = vld [vmem:[#allocation11 + $0x30] ss:$8 sps:$4 sm:$0xff]  }
  0xb6   :  { %879 = vmatprep.subr.bf16.mxu0 %v2058_v22  ;;  %v2097_v22 = vld [vmem:[#allocation11 + $0x24] ss:$8 sps:$4 sm:$0xff]  }
  0xb9   :  { %880 = vmatpush2.bf16.msra.mxu0 %v2056_v23  ;;  %v2095_v23 = vld [vmem:[#allocation11 + $0x20] ss:$8 sps:$4 sm:$0xff]  }
  0xba   :  { %881 = vmatprep.subr.bf16.mxu0 %v2061_v24  ;;  %v2100_v24 = vld [vmem:[#allocation11 + $0x14] ss:$8 sps:$4 sm:$0xff]  }
  0xbd   :  { %882 = vmatpush2.bf16.msra.mxu0 %v2059_v25  ;;  %v2098_v25 = vld [vmem:[#allocation11 + $0x10] ss:$8 sps:$4 sm:$0xff]  }
  0xbe   :  { %883 = vmatprep.subr.bf16.mxu0 %v2064_v47  ;;  %v2130_v47 = vld [vmem:[#allocation12 + $0x74] ss:$8 sps:$4 sm:$0xff]  }
  0xc1   :  { %884 = vmatpush2.bf16.msra.mxu0 %v2062_v48  ;;  %v2133_v48 = vld [vmem:[#allocation12 + $0x64] ss:$8 sps:$4 sm:$0xff]  }
  0xc2   :  { %885 = vmatprep.subr.bf16.mxu0 %v2067_v49  ;;  %v2131_v49 = vld [vmem:[#allocation12 + $0x60] ss:$8 sps:$4 sm:$0xff]  }
  0xc5   :  { %886 = vmatpush2.bf16.msra.mxu0 %v2065_v50  ;;  %v2136_v50 = vld [vmem:[#allocation12 + $0x54] ss:$8 sps:$4 sm:$0xff]  }
  0xc6   :  { %887 = vmatprep.subr.bf16.mxu0 %v2070_v51  ;;  %v2134_v51 = vld [vmem:[#allocation12 + $0x50] ss:$8 sps:$4 sm:$0xff]  }
  0xc9   :  { %888 = vmatpush2.bf16.msra.mxu0 %v2068_v52  ;;  %v2139_v52 = vld [vmem:[#allocation12 + $0x44] ss:$8 sps:$4 sm:$0xff]  }
  0xca   :  { %889 = vmatprep.subr.bf16.mxu0 %v2073_v53  ;;  %v2137_v53 = vld [vmem:[#allocation12 + $0x40] ss:$8 sps:$4 sm:$0xff]  }
  0xcd   :  { %890 = vmatpush2.bf16.msra.mxu0 %v2071_v54  ;;  %v2142_v54 = vld [vmem:[#allocation12 + $0x34] ss:$8 sps:$4 sm:$0xff]  }
  0xce   :  { %891 = vmatprep.subr.bf16.mxu0 %v2076_v55  ;;  %v2140_v55 = vld [vmem:[#allocation12 + $0x30] ss:$8 sps:$4 sm:$0xff]  }
  0xd1   :  { %892 = vmatpush2.bf16.msra.mxu0 %v2074_v56  ;;  %v2145_v56 = vld [vmem:[#allocation12 + $0x24] ss:$8 sps:$4 sm:$0xff]  }
  0xd2   :  { %893 = vmatprep.subr.bf16.mxu0 %v2079_v57  ;;  %v2143_v57 = vld [vmem:[#allocation12 + $0x20] ss:$8 sps:$4 sm:$0xff]  }
  0xd5   :  { %894 = vmatpush2.bf16.msra.mxu0 %v2077_v58  ;;  %v2148_v58 = vld [vmem:[#allocation12 + $0x14] ss:$8 sps:$4 sm:$0xff]  }
  0xd6   :  { %1395 = vmatprep.subr.bf16.mxu0 %v2130_v47  ;;  %v2170_v47 = vld [vmem:[#allocation12 + $0x90] ss:$8 sps:$4 sm:$0xff]  }
 0x158   :  { %v391_v32 = vpop.f32.mrf.mxu0 }
 0x159   :  { %v392_v38 = vadd.f32 %v391_v32, %v190_v33  ;;  %v2109_v32 = vld [vmem:[#allocation11 + $0xe4] ss:$8 sps:$4 sm:$0xff]  }
 0x15a   :  { %v393_v34 = vpop.f32.mrf.mxu0 }
 0x15b   :  { %v394_v35 = vadd.f32 %v393_v34, %v194_v31  ;;  %v2112_v34 = vld [vmem:[#allocation11 + $0xd4] ss:$8 sps:$4 sm:$0xff]  }
 0x15c   :  { %v395_v36 = vpop.f32.mrf.mxu0 }
 0x15d   :  { %v396_v37 = vadd.f32 %v395_v36, %v190_v33  ;;  %2224 = vtanh.f32 %v394_v35  ;;  %v2107_v33 = vld [vmem:[#allocation11 + $0xe0] ss:$8 sps:$4 sm:$0xff]   ;;  %v2110_v35 = vld [vmem:[#allocation11 + $0xd0] ss:$8 sps:$4 sm:$0xff]   ;;  %v2115_v36 = vld [vmem:[#allocation11 + $0xc4] ss:$8 sps:$4 sm:$0xff]  }
 0x15e   :  { %v397_v39 = vpop.f32.mrf.mxu0 }
 0x15f   :  { %v398_v40 = vadd.f32 %v397_v39, %v194_v31  ;;  %2226 = vtanh.f32 %v396_v37  ;;  %v2104_v31 = vld [vmem:[#allocation11 + $0xf0] ss:$8 sps:$4 sm:$0xff]   ;;  %v2113_v37 = vld [vmem:[#allocation11 + $0xc0] ss:$8 sps:$4 sm:$0xff]  }
 0x160   :  { %v2116_v39 = vld [vmem:[#allocation11 + $0xb0] ss:$8 sps:$4 sm:$0xff]  }
 0x161   :  { %2228 = vtanh.f32 %v398_v40  ;;  %v2121_v40 = vld [vmem:[#allocation11 + $0xa4] ss:$8 sps:$4 sm:$0xff]  }
 0x162   :  { %2230 = vtanh.f32 %v392_v38  ;;  %v2118_v38 = vld [vmem:[#allocation11 + $0xb4] ss:$8 sps:$4 sm:$0xff]  }
 0x16a   :  { %v2225_v41 = vpop.eup %2224 }
 0x16c   :  { %v2227_v42 = vpop.eup %2226 }
 0x16e   :  { %v2229_v43 = vpop.eup %2228 }
 0x16f   :  { %v2231_v44 = vpop.eup %2230  ;;  %v405_v45 = vpack.c.bf16 %v2229_v43, %v2225_v41  ;;  %v2119_v41 = vld [vmem:[#allocation11 + $0xa0] ss:$8 sps:$4 sm:$0xff]   ;;  %v2122_v43 = vld [vmem:[#allocation11 + $0x90] ss:$8 sps:$4 sm:$0xff]  }
 0x170   :  { %v404_v46 = vpack.c.bf16 %v2227_v42, %v2231_v44  ;;  %v2124_v42 = vld [vmem:[#allocation11 + $0x94] ss:$8 sps:$4 sm:$0xff]   ;;  %v2127_v44 = vld [vmem:[#allocation11 + $0x84] ss:$8 sps:$4 sm:$0xff]  }
 0x171   :  { %642 = vmatprep.mubr.bf16.mxu1 %v405_v45  ;;  %v2125_v45 = vld [vmem:[#allocation11 + $0x80] ss:$8 sps:$4 sm:$0xff]  }
 0x172   :  { %643 = vmatmul.mubr.bf16.vlgmr.msra.gmra.mxu1 %v404_v46  ;;  %v2128_v46 = vld [vmem:[#allocation12 + $0x70] ss:$8 sps:$4 sm:$0xff]  }
 0x173   :  { %1143 = vmatpush1.bf16.msra.mxu1 %v2080_v59  ;;  %v2146_v59 = vld [vmem:[#allocation12 + $0x10] ss:$8 sps:$4 sm:$0xff]  }
 0x174   :  { %1144 = vmatprep.subr.bf16.mxu1 %v2085_v61  ;;  %v2149_v61 = vld [vmem:[#allocation12] ss:$8 sps:$4 sm:$0xff]  }
 0x177   :  { %1145 = vmatpush1.bf16.msra.mxu1 %v2083_v62  ;;  %v2154_v62 = vld [vmem:[#allocation12 + $0xf4] ss:$8 sps:$4 sm:$0xff]  }
 0x178   :  { %1146 = vmatprep.subr.bf16.mxu1 %v2088_v63  ;;  %v2152_v63 = vld [vmem:[#allocation12 + $0xf0] ss:$8 sps:$4 sm:$0xff]  }
 0x17b   :  { %1147 = vmatpush1.bf16.msra.mxu1 %v2086_v0  ;;  %v2157_v0 = vld [vmem:[#allocation12 + $0xe4] ss:$8 sps:$4 sm:$0xff]  }
 0x17c   :  { %1148 = vmatprep.subr.bf16.mxu1 %v2091_v1  ;;  %v2155_v1 = vld [vmem:[#allocation12 + $0xe0] ss:$8 sps:$4 sm:$0xff]  }
 0x17f   :  { %1149 = vmatpush1.bf16.msra.mxu1 %v2089_v2  ;;  %v691_v2 = vld [vmem:[%s2642_s6] sm:$0x3] }
 0x180   :  { %1150 = vmatprep.subr.bf16.mxu1 %v2094_v20  ;;  %v696_v3 = vrot.slane %v691_v2, %v2592_v30 }
 0x183   :  { %1151 = vmatpush1.bf16.msra.mxu1 %v2092_v21  ;;  %v917_v21 = vstv %s2649_s13 }
 0x184   :  { %1152 = vmatprep.subr.bf16.mxu1 %v2097_v22 }
 0x187   :  { %1153 = vmatpush1.bf16.msra.mxu1 %v2095_v23 }
 0x188   :  { %1154 = vmatprep.subr.bf16.mxu1 %v2100_v24 }
 0x18b   :  { %1155 = vmatpush1.bf16.msra.mxu1 %v2098_v25 }
 0x18c   :  { %1156 = vmatprep.subr.bf16.mxu1 %v2103_v26 }
 0x18f   :  { %1157 = vmatpush1.bf16.msra.mxu1 %v2101_v27 }
 0x190   :  { %1158 = vmatprep.subr.bf16.mxu1 %v2106_v29 }
 0x193   :  { %1159 = vmatpush2.bf16.msra.mxu1 %v2104_v31 }
 0x194   :  { %1160 = vmatprep.subr.bf16.mxu1 %v2109_v32 }
 0x197   :  { %1161 = vmatpush2.bf16.msra.mxu1 %v2107_v33 }
 0x198   :  { %1162 = vmatprep.subr.bf16.mxu1 %v2112_v34 }
 0x19b   :  { %1163 = vmatpush2.bf16.msra.mxu1 %v2110_v35 }
 0x19c   :  { %1164 = vmatprep.subr.bf16.mxu1 %v2115_v36 }
 0x19f   :  { %1165 = vmatpush2.bf16.msra.mxu1 %v2113_v37 }
 0x1a0   :  { %1166 = vmatprep.subr.bf16.mxu1 %v2118_v38  ;;  %v2160_v38 = vld [vmem:[#allocation12 + $0xd4] ss:$8 sps:$4 sm:$0xff]  }
 0x1a3   :  { %1167 = vmatpush2.bf16.msra.mxu1 %v2116_v39  ;;  %v2158_v39 = vld [vmem:[#allocation12 + $0xd0] ss:$8 sps:$4 sm:$0xff]  }
 0x1a4   :  { %1168 = vmatprep.subr.bf16.mxu1 %v2121_v40  ;;  %v2163_v40 = vld [vmem:[#allocation12 + $0xc4] ss:$8 sps:$4 sm:$0xff]  }
 0x1a7   :  { %1169 = vmatpush2.bf16.msra.mxu1 %v2119_v41  ;;  %v2161_v41 = vld [vmem:[#allocation12 + $0xc0] ss:$8 sps:$4 sm:$0xff]  }
 0x1a8   :  { %1170 = vmatprep.subr.bf16.mxu1 %v2124_v42  ;;  %v2166_v42 = vld [vmem:[#allocation12 + $0xb4] ss:$8 sps:$4 sm:$0xff]  }
 0x1ab   :  { %1171 = vmatpush2.bf16.msra.mxu1 %v2122_v43  ;;  %v2164_v43 = vld [vmem:[#allocation12 + $0xb0] ss:$8 sps:$4 sm:$0xff]  }
 0x1ac   :  { %1172 = vmatprep.subr.bf16.mxu1 %v2127_v44  ;;  %v2169_v44 = vld [vmem:[#allocation12 + $0xa4] ss:$8 sps:$4 sm:$0xff]  }
 0x1af   :  { %1173 = vmatpush2.bf16.msra.mxu1 %v2125_v45  ;;  %v2167_v45 = vld [vmem:[#allocation12 + $0xa0] ss:$8 sps:$4 sm:$0xff]  }
 0x232   :  { %v644_v5 = vpop.f32.mrf.mxu1 }
 0x233   :  { %v645_v11 = vadd.f32 %v644_v5, %v443_v6 }
 0x234   :  { %v646_v7 = vpop.f32.mrf.mxu1 }
 0x235   :  { %v647_v8 = vadd.f32 %v646_v7, %v447_v4 }
 0x236   :  { %v648_v9 = vpop.f32.mrf.mxu1 }
 0x237   :  { %v649_v10 = vadd.f32 %v648_v9, %v443_v6  ;;  %2232 = vtanh.f32 %v647_v8 }
 0x238   :  { %v650_v12 = vpop.f32.mrf.mxu1 }
 0x239   :  { %v651_v13 = vadd.f32 %v650_v12, %v447_v4  ;;  %2234 = vtanh.f32 %v649_v10  ;;  %v700_v4 = vrot.slane %v691_v2, %v2587_v28  ;;  %v2202_v2 = vld [vmem:[#allocation14 + $0xf4] ss:$8 sps:$4 sm:$0xff]  }
 0x23b   :  { %2236 = vtanh.f32 %v651_v13 }
 0x23c   :  { %2238 = vtanh.f32 %v645_v11 }
 0x244   :  { %v2233_v14 = vpop.eup %2232 }
 0x246   :  { %v2235_v15 = vpop.eup %2234 }
 0x248   :  { %v2237_v16 = vpop.eup %2236 }
 0x249   :  { %v2239_v17 = vpop.eup %2238  ;;  %v658_v18 = vpack.c.bf16 %v2237_v16, %v2233_v14 }
 0x24a   :  { %v657_v19 = vpack.c.bf16 %v2235_v15, %v2239_v17 }
 0x24b   :  { %895 = vmatprep.mubr.bf16.mxu0 %v658_v18 }
 0x24c   :  { %896 = vmatmul.mubr.bf16.vlgmr.msra.gmra.mxu0 %v657_v19 }
 0x24d   :  { %1396 = vmatpush1.bf16.msra.mxu0 %v2128_v46  ;;  %v2172_v46 = vld [vmem:[#allocation12 + $0x94] ss:$8 sps:$4 sm:$0xff]  }
 0x24e   :  { %1397 = vmatprep.subr.bf16.mxu0 %v2133_v48  ;;  %v2175_v48 = vld [vmem:[#allocation12 + $0x84] ss:$8 sps:$4 sm:$0xff]  }
 0x251   :  { %1398 = vmatpush1.bf16.msra.mxu0 %v2131_v49  ;;  %v2173_v49 = vld [vmem:[#allocation12 + $0x80] ss:$8 sps:$4 sm:$0xff]  }
 0x252   :  { %1399 = vmatprep.subr.bf16.mxu0 %v2136_v50  ;;  %v2176_v50 = vld [vmem:[#allocation14 + $0x70] ss:$8 sps:$4 sm:$0xff]  }
 0x255   :  { %1400 = vmatpush1.bf16.msra.mxu0 %v2134_v51  ;;  %v2178_v51 = vld [vmem:[#allocation14 + $0x74] ss:$8 sps:$4 sm:$0xff]  }
 0x256   :  { %1401 = vmatprep.subr.bf16.mxu0 %v2139_v52  ;;  %v2181_v52 = vld [vmem:[#allocation14 + $0x64] ss:$8 sps:$4 sm:$0xff]   ;;  %1648 = vmatprep.subr.bf16.mxu1 %v2178_v51 }
 0x259   :  { %1402 = vmatpush1.bf16.msra.mxu0 %v2137_v53  ;;  %v2179_v53 = vld [vmem:[#allocation14 + $0x60] ss:$8 sps:$4 sm:$0xff]  }
 0x25a   :  { %1403 = vmatprep.subr.bf16.mxu0 %v2142_v54  ;;  %v2184_v54 = vld [vmem:[#allocation14 + $0x54] ss:$8 sps:$4 sm:$0xff]  }
 0x25d   :  { %1404 = vmatpush1.bf16.msra.mxu0 %v2140_v55  ;;  %v2182_v55 = vld [vmem:[#allocation14 + $0x50] ss:$8 sps:$4 sm:$0xff]  }
 0x25e   :  { %1405 = vmatprep.subr.bf16.mxu0 %v2145_v56  ;;  %v2187_v56 = vld [vmem:[#allocation14 + $0x44] ss:$8 sps:$4 sm:$0xff]  }
 0x261   :  { %1406 = vmatpush1.bf16.msra.mxu0 %v2143_v57  ;;  %v2185_v57 = vld [vmem:[#allocation14 + $0x40] ss:$8 sps:$4 sm:$0xff]  }
 0x262   :  { %1407 = vmatprep.subr.bf16.mxu0 %v2148_v58  ;;  %v2190_v58 = vld [vmem:[#allocation14 + $0x34] ss:$8 sps:$4 sm:$0xff]  }
 0x265   :  { %1408 = vmatpush1.bf16.msra.mxu0 %v2146_v59  ;;  %v2188_v59 = vld [vmem:[#allocation14 + $0x30] ss:$8 sps:$4 sm:$0xff]  }
 0x266   :  { %1409 = vmatprep.subr.bf16.mxu0 %v2151_v60  ;;  %v2193_v60 = vld [vmem:[#allocation14 + $0x24] ss:$8 sps:$4 sm:$0xff]  }
 0x269   :  { %1410 = vmatpush1.bf16.msra.mxu0 %v2149_v61  ;;  %v2191_v61 = vld [vmem:[#allocation14 + $0x20] ss:$8 sps:$4 sm:$0xff]  }
 0x26a   :  { %1411 = vmatprep.subr.bf16.mxu0 %v2154_v62  ;;  %v2196_v62 = vld [vmem:[#allocation14 + $0x14] ss:$8 sps:$4 sm:$0xff]  }
 0x26d   :  { %1412 = vmatpush2.bf16.msra.mxu0 %v2152_v63  ;;  %v2194_v63 = vld [vmem:[#allocation14 + $0x10] ss:$8 sps:$4 sm:$0xff]  }
 0x26e   :  { %1413 = vmatprep.subr.bf16.mxu0 %v2157_v0  ;;  %v2199_v0 = vld [vmem:[#allocation14 + $0x4] ss:$8 sps:$4 sm:$0xff]  }
 0x271   :  { %1414 = vmatpush2.bf16.msra.mxu0 %v2155_v1  ;;  %v2197_v1 = vld [vmem:[#allocation14] ss:$8 sps:$4 sm:$0xff]  }
 0x272   :  { %1415 = vmatprep.subr.bf16.mxu0 %v2160_v38 }
 0x275   :  { %1416 = vmatpush2.bf16.msra.mxu0 %v2158_v39 }
 0x276   :  { %1417 = vmatprep.subr.bf16.mxu0 %v2163_v40 }
 0x279   :  { %1418 = vmatpush2.bf16.msra.mxu0 %v2161_v41 }
 0x27a   :  { %1419 = vmatprep.subr.bf16.mxu0 %v2166_v42 }
 0x27d   :  { %1420 = vmatpush2.bf16.msra.mxu0 %v2164_v43 }
 0x27e   :  { %1421 = vmatprep.subr.bf16.mxu0 %v2169_v44 }
 0x281   :  { %1422 = vmatpush2.bf16.msra.mxu0 %v2167_v45 }
 0x282   :  { %1423 = vmatprep.subr.bf16.mxu0 %v2172_v46 }
 0x285   :  { %1424 = vmatpush2.bf16.msra.mxu0 %v2170_v47 }
 0x286   :  { %1425 = vmatprep.subr.bf16.mxu0 %v2175_v48 }
 0x289   :  { %1426 = vmatpush2.bf16.msra.mxu0 %v2173_v49 }
 0x30c   :  { %v897_v5 = vpop.f32.mrf.mxu0 }
 0x30d   :  { %v898_v6 = vadd.f32 %v897_v5, %v696_v3  ;;  %v2203_v5 = vld [vmem:[#allocation14 + $0xe0] ss:$8 sps:$4 sm:$0xff]  }
 0x30e   :  { %v899_v7 = vpop.f32.mrf.mxu0 }
 0x30f   :  { %v900_v8 = vadd.f32 %v899_v7, %v700_v4  ;;  %v907_v10 = vmul.f32 %v898_v6, %v898_v6 }
 0x310   :  { %v901_v9 = vpop.f32.mrf.mxu0 }
 0x311   :  { %v909_v11 = vmul.f32 %v900_v8, %v900_v8  ;;  %v902_v12 = vadd.f32 %v901_v9, %v696_v3  ;;  %v2200_v3 = vld [vmem:[#allocation14 + $0xf0] ss:$8 sps:$4 sm:$0xff]  }
 0x312   :  { %v903_v13 = vpop.f32.mrf.mxu0 }
 0x313   :  { %v911_v14 = vadd.f32 %v909_v11, %v907_v10  ;;  %v904_v15 = vadd.f32 %v903_v13, %v700_v4  ;;  %v908_v17 = vmul.f32 %v902_v12, %v902_v12  ;;  %v2205_v4 = vld [vmem:[#allocation14 + $0xe4] ss:$8 sps:$4 sm:$0xff]  }
 0x315   :  { %v913_v16 = vmax.f32 %v911_v14, 1e-30  ;;  %v910_v18 = vmul.f32 %v904_v15, %v904_v15 }
 0x317   :  { %2240 = vrsqrt.f32 %v913_v16  ;;  %v912_v19 = vadd.f32 %v910_v18, %v908_v17 }
 0x319   :  { %v914_v20 = vmax.f32 %v912_v19, 1e-30 }
 0x31b   :  { %2242 = vrsqrt.f32 %v914_v20 }
 0x324   :  { %v2241_v22 = vpop.eup %2240 }
 0x325   :  { %v918_v23 = vmul.f32 %v2241_v22, %v917_v21 }
 0x327   :  { %v920_v24 = vsub.f32 1.0, %v918_v23  ;;  %v2208_v23 = vld [vmem:[#allocation14 + $0xd4] ss:$8 sps:$4 sm:$0xff]  }
 0x328   :  { %v2243_v25 = vpop.eup %2242 }
 0x329   :  { %v922_v26 = vmax.f32 %v920_v24, 0.0  ;;  %v919_v27 = vmul.f32 %v2243_v25, %v917_v21  ;;  %v2206_v24 = vld [vmem:[#allocation14 + $0xd0] ss:$8 sps:$4 sm:$0xff]   ;;  %v2211_v25 = vld [vmem:[#allocation14 + $0xc4] ss:$8 sps:$4 sm:$0xff]  }
 0x32b   :  { %v924_v29 = vmul.f32 %v922_v26, %v898_v6  ;;  %v928_v31 = vmul.f32 %v922_v26, %v900_v8  ;;  %v921_v32 = vsub.f32 1.0, %v919_v27  ;;  %v970_v6 = vld [vmem:[%s2644_s8] sm:$0x3]  ;;  %v2214_v27 = vld [vmem:[#allocation14 + $0xb4] ss:$8 sps:$4 sm:$0xff]  }
 0x32c   :  { %v979_v7 = vrot.slane %v970_v6, %v2587_v28  ;;  %v975_v9 = vrot.slane %v970_v6, %v2592_v30  ;;  %v2209_v26 = vld [vmem:[#allocation14 + $0xc0] ss:$8 sps:$4 sm:$0xff]  }
 0x32d   :  { %926 = vst [vmem:[#allocation16] sm:$0xff] %v924_v29  ;;  %930 = vst [vmem:[#allocation16 + $0x8] sm:$0xff] %v928_v31  ;;  %v923_v33 = vmax.f32 %v921_v32, 0.0  ;;  %v2215_v32 = vld [vmem:[#allocation14 + $0xa0] ss:$8 sps:$4 sm:$0xff]  }
 0x32f   :  { %v925_v34 = vmul.f32 %v923_v33, %v902_v12  ;;  %v929_v35 = vmul.f32 %v923_v33, %v904_v15  ;;  %v2220_v33 = vld [vmem:[#allocation14 + $0x94] ss:$8 sps:$4 sm:$0xff]  }
 0x331   :  { %927 = vst [vmem:[#allocation16 + $0x10] sm:$0xff] %v925_v34  ;;  %931 = vst [vmem:[#allocation16 + $0x18] sm:$0xff] %v929_v35  ;;  %v937_v36 = vpack.c.bf16 %v929_v35, %v928_v31  ;;  %v936_v37 = vpack.c.bf16 %v925_v34, %v924_v29  ;;  %v2212_v29 = vld [vmem:[#allocation14 + $0xb0] ss:$8 sps:$4 sm:$0xff]   ;;  %v2217_v31 = vld [vmem:[#allocation14 + $0xa4] ss:$8 sps:$4 sm:$0xff]  }
 0x332   :  { %v2218_v34 = vld [vmem:[#allocation14 + $0x90] ss:$8 sps:$4 sm:$0xff]   ;;  %v2223_v35 = vld [vmem:[#allocation14 + $0x84] ss:$8 sps:$4 sm:$0xff]  }
 0x333   :  { %1174 = vmatprep.mubr.bf16.mxu1 %v937_v36  ;;  %v2221_v36 = vld [vmem:[#allocation14 + $0x80] ss:$8 sps:$4 sm:$0xff]  }
 0x334   :  { %1175 = vmatmul.mubr.bf16.vlgmr.msra.gmra.mxu1 %v936_v37  ;;  %v1223_v37 = vld [vmem:[%s2646_s10] sm:$0x3]  ;;  %s2463_s10 = smov [#allocation16]  }
 0x335   :  { %1649 = vmatpush1.bf16.msra.mxu1 %v2176_v50  ;;  %v1232_v38 = vrot.slane %v1223_v37, %v2587_v28  ;;  %v1228_v40 = vrot.slane %v1223_v37, %v2592_v30  ;;  %s1712_s28 = sshll.u32 %s2463_s10, 4  ;;  %s1713_s28 = int_to_ptr.vmem [resolvable:$true] %s1712_s28 }
 0x336   :  { %1650 = vmatprep.subr.bf16.mxu1 %v2181_v52  ;;  %s2400_s29 = scalar_lea.vmem %s1713_s28, 512  ;;  %p2405_p8 = scmp.lt.s32.totalorder %s1713_s28, %s1713_s28 }
 0x337   :  { %p2401_p7 = scmp.ne.s32.totalorder %s1713_s28, %s2400_s29  ;;  %p2406_p9 = scmp.lt.s32.totalorder %s2400_s29, %s2400_s29 }
 0x339   :  { %1651 = vmatpush1.bf16.msra.mxu1 %v2179_v53  ;;  %p2407_p10 = por %p2406_p9, %p2405_p8 }
 0x33a   :  { %1652 = vmatprep.subr.bf16.mxu1 %v2184_v54 }
 0x33b   :  { %p2408_p11 = pnand %p2407_p10, %p2401_p7 }
 0x33d   :  { %1653 = vmatpush1.bf16.msra.mxu1 %v2182_v55 }
 0x33e   :  { %1654 = vmatprep.subr.bf16.mxu1 %v2187_v56 }
 0x341   :  { %1655 = vmatpush1.bf16.msra.mxu1 %v2185_v57 }
 0x342   :  { %1656 = vmatprep.subr.bf16.mxu1 %v2190_v58 }
 0x345   :  { %1657 = vmatpush1.bf16.msra.mxu1 %v2188_v59 }
 0x346   :  { %1658 = vmatprep.subr.bf16.mxu1 %v2193_v60 }
 0x349   :  { %1659 = vmatpush1.bf16.msra.mxu1 %v2191_v61 }
 0x34a   :  { %1660 = vmatprep.subr.bf16.mxu1 %v2196_v62 }
 0x34d   :  { %1661 = vmatpush1.bf16.msra.mxu1 %v2194_v63 }
 0x34e   :  { %1662 = vmatprep.subr.bf16.mxu1 %v2199_v0 }
 0x351   :  { %1663 = vmatpush1.bf16.msra.mxu1 %v2197_v1 }
 0x352   :  { %1664 = vmatprep.subr.bf16.mxu1 %v2202_v2 }
 0x355   :  { %1665 = vmatpush2.bf16.msra.mxu1 %v2200_v3 }
 0x356   :  { %1666 = vmatprep.subr.bf16.mxu1 %v2205_v4 }
 0x359   :  { %1667 = vmatpush2.bf16.msra.mxu1 %v2203_v5 }
 0x35a   :  { %1668 = vmatprep.subr.bf16.mxu1 %v2208_v23 }
 0x35d   :  { %1669 = vmatpush2.bf16.msra.mxu1 %v2206_v24 }
 0x35e   :  { %1670 = vmatprep.subr.bf16.mxu1 %v2211_v25 }
 0x361   :  { %1671 = vmatpush2.bf16.msra.mxu1 %v2209_v26 }
 0x362   :  { %1672 = vmatprep.subr.bf16.mxu1 %v2214_v27 }
 0x365   :  { %1673 = vmatpush2.bf16.msra.mxu1 %v2212_v29 }
 0x366   :  { %1674 = vmatprep.subr.bf16.mxu1 %v2217_v31 }
 0x369   :  { %1675 = vmatpush2.bf16.msra.mxu1 %v2215_v32 }
 0x36a   :  { %1676 = vmatprep.subr.bf16.mxu1 %v2220_v33 }
 0x36d   :  { %1677 = vmatpush2.bf16.msra.mxu1 %v2218_v34 }
 0x36e   :  { %1678 = vmatprep.subr.bf16.mxu1 %v2223_v35 }
 0x371   :  { %1679 = vmatpush2.bf16.msra.mxu1 %v2221_v36 }
 0x3f4   :  { %v1176_v8 = vpop.f32.mrf.mxu1 }
 0x3f5   :  { %v1177_v14 = vadd.f32 %v1176_v8, %v975_v9 }
 0x3f6   :  { %v1178_v10 = vpop.f32.mrf.mxu1 }
 0x3f7   :  { %v1179_v11 = vadd.f32 %v1178_v10, %v979_v7 }
 0x3f8   :  { %v1180_v12 = vpop.f32.mrf.mxu1 }
 0x3f9   :  { %v1181_v13 = vadd.f32 %v1180_v12, %v975_v9  ;;  %2244 = vtanh.f32 %v1179_v11 }
 0x3fa   :  { %v1182_v15 = vpop.f32.mrf.mxu1 }
 0x3fb   :  { %v1183_v16 = vadd.f32 %v1182_v15, %v979_v7  ;;  %2246 = vtanh.f32 %v1181_v13 }
 0x3fd   :  { %2248 = vtanh.f32 %v1183_v16 }
 0x3fe   :  { %2250 = vtanh.f32 %v1177_v14 }
 0x406   :  { %v2245_v17 = vpop.eup %2244 }
 0x408   :  { %v2247_v18 = vpop.eup %2246 }
 0x40a   :  { %v2249_v19 = vpop.eup %2248 }
 0x40b   :  { %v2251_v20 = vpop.eup %2250  ;;  %v1190_v21 = vpack.c.bf16 %v2249_v19, %v2245_v17 }
 0x40c   :  { %v1189_v22 = vpack.c.bf16 %v2247_v18, %v2251_v20 }
 0x40d   :  { %1427 = vmatprep.mubr.bf16.mxu0 %v1190_v21 }
 0x40e   :  { %1428 = vmatmul.mubr.bf16.vlgmr.msra.gmra.mxu0 %v1189_v22 }
 0x4ce   :  { %v1429_v39 = vpop.f32.mrf.mxu0 }
 0x4cf   :  { %v1430_v45 = vadd.f32 %v1429_v39, %v1228_v40 }
 0x4d0   :  { %v1431_v41 = vpop.f32.mrf.mxu0 }
 0x4d1   :  { %v1432_v42 = vadd.f32 %v1431_v41, %v1232_v38 }
 0x4d2   :  { %v1433_v43 = vpop.f32.mrf.mxu0 }
 0x4d3   :  { %v1434_v44 = vadd.f32 %v1433_v43, %v1228_v40  ;;  %2252 = vtanh.f32 %v1432_v42 }
 0x4d4   :  { %v1435_v46 = vpop.f32.mrf.mxu0 }
 0x4d5   :  { %v1436_v47 = vadd.f32 %v1435_v46, %v1232_v38  ;;  %2254 = vtanh.f32 %v1434_v44 }
 0x4d7   :  { %2256 = vtanh.f32 %v1436_v47 }
 0x4d8   :  { %2258 = vtanh.f32 %v1430_v45 }
 0x4e0   :  { %v2253_v48 = vpop.eup %2252 }
 0x4e2   :  { %v2255_v49 = vpop.eup %2254 }
 0x4e4   :  { %v2257_v50 = vpop.eup %2256 }
 0x4e5   :  { %v2259_v51 = vpop.eup %2258  ;;  %v1443_v52 = vpack.c.bf16 %v2257_v50, %v2253_v48 }
 0x4e6   :  { %v1442_v53 = vpack.c.bf16 %v2255_v49, %v2259_v51 }
 0x4e7   :  { %1680 = vmatprep.mubr.bf16.mxu1 %v1443_v52 }
 0x4e8   :  { %1681 = vmatmul.mubr.bf16.vlgmr.msra.gmra.mxu1 %v1442_v53 }
 0x4e9   :  { %2411 = shalt.err (!%p2408_p11)
}
 0x4ea   :  { %1718 = dma.vmem_to_hbm [thread:$0]  %s1713_s28, 512, %s2651_s15, [#allocation17], %s2458_s5, %s2458_s5, %s2459_s24  }
 0x4eb   :  { %v1476_v54 = vld [vmem:[%s2648_s12] sm:$0x3]  ;;  %s2464_s17 = smov [#allocation15]  }
 0x4ec   :  { %v1481_v55 = vrot.slane %v1476_v54, %v2592_v30  ;;  %v1485_v56 = vrot.slane %v1476_v54, %v2587_v28  ;;  %s1700_s18 = sshll.u32 %s2464_s17, 4  ;;  %s1701_s18 = int_to_ptr.vmem [resolvable:$true] %s1700_s18 }
 0x4ed   :  { %s2420_s12 = scalar_lea.vmem %s1701_s18, 512  ;;  %p2425_p13 = scmp.lt.s32.totalorder %s1701_s18, %s1701_s18 }
 0x4ee   :  { %p2421_p12 = scmp.ne.s32.totalorder %s1701_s18, %s2420_s12  ;;  %p2426_p0 = scmp.lt.s32.totalorder %s2420_s12, %s2420_s12 }
 0x4f0   :  { %p2427_p1 = por %p2426_p0, %p2425_p13 }
 0x4f2   :  { %p2428_p2 = pnand %p2427_p1, %p2421_p12 }
 0x5a8   :  { %v1682_v57 = vpop.f32.mrf.mxu1 }
 0x5a9   :  { %v1683_v58 = vadd.f32 %v1682_v57, %v1481_v55 }
 0x5aa   :  { %v1684_v59 = vpop.f32.mrf.mxu1 }
 0x5ab   :  { %1691 = vst [vmem:[#allocation15] sm:$0xff] %v1683_v58  ;;  %v1685_v60 = vadd.f32 %v1684_v59, %v1485_v56 }
 0x5ac   :  { %v1686_v61 = vpop.f32.mrf.mxu1 }
 0x5ad   :  { %1692 = vst [vmem:[#allocation15 + $0x8] sm:$0xff] %v1685_v60  ;;  %v1687_v62 = vadd.f32 %v1686_v61, %v1481_v55 }
 0x5ae   :  { %v1688_v63 = vpop.f32.mrf.mxu1 }
 0x5af   :  { %1693 = vst [vmem:[#allocation15 + $0x10] sm:$0xff] %v1687_v62  ;;  %v1689_v0 = vadd.f32 %v1688_v63, %v1485_v56 }
 0x5b1   :  { %1694 = vst [vmem:[#allocation15 + $0x18] sm:$0xff] %v1689_v0 }
 0x5b2   :  { %2431 = shalt.err (!%p2428_p2)
}
 0x5b3   :  { %1706 = dma.vmem_to_hbm [thread:$0]  %s1701_s18, 512, %s2650_s14, [#allocation5], %s2458_s5, %s2458_s5, %s2459_s24  }
 0x5b4   :  { %2448 = dma.done.wait [#allocation5], 512  }
 0x5b5   :  { %2449 = vsyncadd [#allocation5], 4294966784 }
 0x5b6   :  { %2450 = dma.done.wait [#allocation17], 512  }
 0x5b7   :  { %2451 = vsyncadd [#allocation17], 4294966784 }
 0x5b8   :  { %1725 = vsyncpa [#allocation4], 1 }
 0x5b9   :  { %1726 = vsyncpa [#allocation7], 1 }
 0x5ba   :  { %1727 = vsyncpa [#allocation10], 1 }
 0x5bb   :  { %1728 = vsyncpa [#allocation13], 1 }
 0x5bc   :  { %1729 = vsyncpa [#allocation5], 1 }
 0x5bd   :  { %1730 = vsyncpa [#allocation17], 1 }

// kernel: tpu_custom_call.1
= control target key start
LH: loop header
LB: loop body
LE: loop exit
PB: predicated region body
PF: predicated region fallthrough
CT: control target
= control target key end

     0   :  { %22 = vsyncpa [#allocation4], 0  ;;  %s2636_s0 = inlined_call_operand.hbm [shape: f32[16,256], index: 0, kind: input, shape index: {}]   ;;  %s2637_s1 = inlined_call_operand.hbm [shape: bf16[256,256], index: 1, kind: input, shape index: {}]   ;;  %s2638_s2 = inlined_call_operand.vmem [shape: f32[1,256], index: 2, kind: input, shape index: {}]   ;;  %s2639_s3 = inlined_call_operand.hbm [shape: bf16[256,256], index: 3, kind: input, shape index: {}]   ;;  %s2640_s4 = inlined_call_operand.vmem [shape: f32[1,256], index: 4, kind: input, shape index: {}]   ;;  %s2641_s5 = inlined_call_operand.hbm [shape: bf16[256,256], index: 5, kind: input, shape index: {}]   ;;  %s2642_s6 = inlined_call_operand.vmem [shape: f32[1,256], index: 6, kind: input, shape index: {}]   ;;  %s2643_s7 = inlined_call_operand.hbm [shape: bf16[256,256], index: 7, kind: input, shape index: {}]   ;;  %s2644_s8 = inlined_call_operand.vmem [shape: f32[1,256], index: 8, kind: input, shape index: {}]   ;;  %s2645_s9 = inlined_call_operand.hbm [shape: bf16[256,256], index: 9, kind: input, shape index: {}]   ;;  %s2646_s10 = inlined_call_operand.vmem [shape: f32[1,256], index: 10, kind: input, shape index: {}]   ;;  %s2647_s11 = inlined_call_operand.hbm [shape: bf16[256,256], index: 11, kind: input, shape index: {}]   ;;  %s2648_s12 = inlined_call_operand.vmem [shape: f32[1,256], index: 12, kind: input, shape index: {}]   ;;  %s2649_s13 = inlined_call_operand.<no memory space> [shape: f32[1], index: 13, kind: input, shape index: {}]   ;;  %s2650_s14 = inlined_call_operand.hbm [shape: f32[16,256], index: 14, kind: output, shape index: {0}]   ;;  %s2651_s15 = inlined_call_operand.hbm [shape: f32[16,256], index: 15, kind: output, shape index: {1}]  }
   0x1   :  { %23 = vsyncpa [#allocation7], 0 }
   0x2   :  { %24 = vsyncpa [#allocation10], 0 }
   0x3   :  { %25 = vsyncpa [#allocation13], 0 }
   0x4   :  { %26 = vsyncpa [#allocation5], 0 }
   0x5   :  { %27 = vsyncpa [#allocation17], 0  ;;  %s2452_s18 = smov [#allocation6]  }
   0x6   :  { %s45_s19 = sshll.u32 %s2452_s18, 4  ;;  %s46_s19 = int_to_ptr.vmem [resolvable:$true] %s45_s19 }
   0x7   :  { %s2268_s20 = scalar_lea.vmem %s46_s19, 4096  ;;  %p2273_p1 = scmp.lt.s32.totalorder %s46_s19, %s46_s19 }
   0x8   :  { %p2269_p0 = scmp.ne.s32.totalorder %s46_s19, %s2268_s20  ;;  %p2274_p2 = scmp.lt.s32.totalorder %s2268_s20, %s2268_s20 }
   0xa   :  { %p2275_p3 = por %p2274_p2, %p2273_p1 }
   0xc   :  { %p2276_p4 = pnand %p2275_p3, %p2269_p0 }
   0xe   :  { %2279 = shalt.err (!%p2276_p4)
}
   0xf   :  { %s2453_s21 = smov 128   ;;  %s2454_s22 = smov 8  }
  0x10   :  { %51 = dma.hbm_to_vmem [thread:$0]  %s2637_s1, 4096, %s46_s19, [#allocation7], %s2453_s21, %s2453_s21, %s2454_s22  }
  0x11   :  { %s2455_s25 = smov [#allocation9]   ;;  %s2456_s27 = smov [#allocation12]  }
  0x12   :  { %s73_s26 = sshll.u32 %s2455_s25, 4  ;;  %s101_s28 = sshll.u32 %s2456_s27, 4  ;;  %s74_s26 = int_to_ptr.vmem [resolvable:$true] %s73_s26  ;;  %s102_s28 = int_to_ptr.vmem [resolvable:$true] %s101_s28 }
  0x13   :  { %s2288_s29 = scalar_lea.vmem %s74_s26, 4096  ;;  %p2293_p6 = scmp.lt.s32.totalorder %s74_s26, %s74_s26 }
  0x14   :  { %p2289_p5 = scmp.ne.s32.totalorder %s74_s26, %s2288_s29  ;;  %p2294_p7 = scmp.lt.s32.totalorder %s2288_s29, %s2288_s29 }
  0x16   :  { %p2295_p8 = por %p2294_p7, %p2293_p6 }
  0x18   :  { %p2296_p9 = pnand %p2295_p8, %p2289_p5 }
  0x1a   :  { %2299 = shalt.err (!%p2296_p9)
}
  0x1b   :  { %79 = dma.hbm_to_vmem [thread:$0]  %s2641_s5, 4096, %s74_s26, [#allocation10], %s2453_s21, %s2453_s21, %s2454_s22  }
  0x1c   :  { %s2308_s1 = scalar_lea.vmem %s102_s28, 4096  ;;  %p2313_p11 = scmp.lt.s32.totalorder %s102_s28, %s102_s28 }
  0x1d   :  { %p2309_p10 = scmp.ne.s32.totalorder %s102_s28, %s2308_s1  ;;  %p2314_p12 = scmp.lt.s32.totalorder %s2308_s1, %s2308_s1 }
  0x1f   :  { %p2315_p13 = por %p2314_p12, %p2313_p11 }
  0x21   :  { %p2316_p0 = pnand %p2315_p13, %p2309_p10 }
  0x23   :  { %2319 = shalt.err (!%p2316_p0)
}
  0x24   :  { %107 = dma.hbm_to_vmem [thread:$0]  %s2645_s9, 4096, %s102_s28, [#allocation13], %s2453_s21, %s2453_s21, %s2454_s22  }
  0x25   :  { %s2457_s19 = smov [#allocation3]  }
  0x26   :  { %s33_s20 = sshll.u32 %s2457_s19, 4  ;;  %s34_s20 = int_to_ptr.vmem [resolvable:$true] %s33_s20 }
  0x27   :  { %s2328_s23 = scalar_lea.vmem %s34_s20, 512  ;;  %p2333_p2 = scmp.lt.s32.totalorder %s34_s20, %s34_s20 }
  0x28   :  { %p2329_p1 = scmp.ne.s32.totalorder %s34_s20, %s2328_s23  ;;  %p2334_p3 = scmp.lt.s32.totalorder %s2328_s23, %s2328_s23 }
  0x2a   :  { %p2335_p4 = por %p2334_p3, %p2333_p2 }
  0x2c   :  { %p2336_p5 = pnand %p2335_p4, %p2329_p1 }
  0x2e   :  { %2339 = shalt.err (!%p2336_p5)
}
  0x2f   :  { %s2458_s5 = smov 256   ;;  %s2459_s24 = smov 16  }
  0x30   :  { %39 = dma.hbm_to_vmem [thread:$0]  %s2636_s0, 512, %s34_s20, [#allocation4], %s2458_s5, %s2458_s5, %s2459_s24  }
  0x31   :  { %s2460_s9 = smov [#allocation8]   ;;  %s2461_s28 = smov [#allocation11]  }
  0x32   :  { %s59_s27 = sshll.u32 %s2460_s9, 4  ;;  %s87_s29 = sshll.u32 %s2461_s28, 4  ;;  %s60_s27 = int_to_ptr.vmem [resolvable:$true] %s59_s27  ;;  %s88_s29 = int_to_ptr.vmem [resolvable:$true] %s87_s29 }
  0x33   :  { %s2348_s30 = scalar_lea.vmem %s60_s27, 4096  ;;  %p2353_p7 = scmp.lt.s32.totalorder %s60_s27, %s60_s27 }
  0x34   :  { %p2349_p6 = scmp.ne.s32.totalorder %s60_s27, %s2348_s30  ;;  %p2354_p8 = scmp.lt.s32.totalorder %s2348_s30, %s2348_s30 }
  0x36   :  { %p2355_p9 = por %p2354_p8, %p2353_p7 }
  0x38   :  { %p2356_p10 = pnand %p2355_p9, %p2349_p6 }
  0x3a   :  { %2359 = shalt.err (!%p2356_p10)
}
  0x3b   :  { %65 = dma.hbm_to_vmem [thread:$0]  %s2639_s3, 4096, %s60_s27, [#allocation7], %s2453_s21, %s2453_s21, %s2454_s22  }
  0x3c   :  { %s2368_s0 = scalar_lea.vmem %s88_s29, 4096  ;;  %p2373_p12 = scmp.lt.s32.totalorder %s88_s29, %s88_s29 }
  0x3d   :  { %p2369_p11 = scmp.ne.s32.totalorder %s88_s29, %s2368_s0  ;;  %p2374_p13 = scmp.lt.s32.totalorder %s2368_s0, %s2368_s0 }
  0x3f   :  { %p2375_p0 = por %p2374_p13, %p2373_p12 }
  0x41   :  { %p2376_p1 = pnand %p2375_p0, %p2369_p11 }
  0x43   :  { %2379 = shalt.err (!%p2376_p1)
}
  0x44   :  { %93 = dma.hbm_to_vmem [thread:$0]  %s2643_s7, 4096, %s88_s29, [#allocation10], %s2453_s21, %s2453_s21, %s2454_s22  }
  0x45   :  { %s2462_s19 = smov [#allocation14]  }
  0x46   :  { %s115_s20 = sshll.u32 %s2462_s19, 4  ;;  %s116_s20 = int_to_ptr.vmem [resolvable:$true] %s115_s20 }
  0x47   :  { %s2388_s23 = scalar_lea.vmem %s116_s20, 4096  ;;  %p2393_p3 = scmp.lt.s32.totalorder %s116_s20, %s116_s20 }
  0x48   :  { %p2389_p2 = scmp.ne.s32.totalorder %s116_s20, %s2388_s23  ;;  %p2394_p4 = scmp.lt.s32.totalorder %s2388_s23, %s2388_s23 }
  0x4a   :  { %p2395_p5 = por %p2394_p4, %p2393_p3 }
  0x4c   :  { %p2396_p6 = pnand %p2395_p5, %p2389_p2 }
  0x4e   :  { %2399 = shalt.err (!%p2396_p6)
}
  0x4f   :  { %121 = dma.hbm_to_vmem [thread:$0]  %s2647_s11, 4096, %s116_s20, [#allocation13], %s2453_s21, %s2453_s21, %s2454_s22  }
  0x50   :  { %2440 = dma.done.wait [#allocation4], 512  }
  0x51   :  { %2441 = vsyncadd [#allocation4], 4294966784 }
  0x52   :  { %2442 = dma.done.wait [#allocation7], 8192  }
  0x53   :  { %2443 = vsyncadd [#allocation7], 4294959104 }
  0x54   :  { %2444 = dma.done.wait [#allocation10], 8192  }
  0x55   :  { %2445 = vsyncadd [#allocation10], 4294959104 }
  0x56   :  { %2446 = dma.done.wait [#allocation13], 8192  }
  0x57   :  { %2447 = vsyncadd [#allocation13], 4294959104  ;;  %v1936_v0 = vld [vmem:[#allocation6 + $0x74] ss:$8 sps:$4 sm:$0xff]   ;;  %v1938_v1 = vld [vmem:[#allocation6 + $0x70] ss:$8 sps:$4 sm:$0xff]  }
  0x58   :  { %357 = vmatprep.subr.bf16.mxu0 %v1936_v0  ;;  %v1939_v2 = vld [vmem:[#allocation6 + $0x64] ss:$8 sps:$4 sm:$0xff]   ;;  %v1941_v3 = vld [vmem:[#allocation6 + $0x60] ss:$8 sps:$4 sm:$0xff]   ;;  %v1942_v4 = vld [vmem:[#allocation6 + $0x54] ss:$8 sps:$4 sm:$0xff]  }
  0x59   :  { %358 = vmatpush1.bf16.msra.mxu0 %v1938_v1  ;;  %v1944_v5 = vld [vmem:[#allocation6 + $0x50] ss:$8 sps:$4 sm:$0xff]   ;;  %v1945_v6 = vld [vmem:[#allocation6 + $0x44] ss:$8 sps:$4 sm:$0xff]   ;;  %v1947_v7 = vld [vmem:[#allocation6 + $0x40] ss:$8 sps:$4 sm:$0xff]  }
  0x5a   :  { %359 = vmatprep.subr.bf16.mxu0 %v1939_v2  ;;  %v1948_v8 = vld [vmem:[#allocation6 + $0x34] ss:$8 sps:$4 sm:$0xff]   ;;  %v1950_v9 = vld [vmem:[#allocation6 + $0x30] ss:$8 sps:$4 sm:$0xff]   ;;  %v1951_v10 = vld [vmem:[#allocation6 + $0x24] ss:$8 sps:$4 sm:$0xff]  }
  0x5b   :  { %v1953_v11 = vld [vmem:[#allocation6 + $0x20] ss:$8 sps:$4 sm:$0xff]   ;;  %v1954_v12 = vld [vmem:[#allocation6 + $0x14] ss:$8 sps:$4 sm:$0xff]   ;;  %v1956_v15 = vld [vmem:[#allocation6 + $0x10] ss:$8 sps:$4 sm:$0xff]  }
  0x5c   :  { %v148_v13 = vld [vmem:[#allocation3 + $0x8] sm:$0xff]  ;;  %v150_v14 = vld [vmem:[#allocation3 + $0x18] sm:$0xff]  ;;  %v147_v55 = vld [vmem:[#allocation3] sm:$0xff] }
  0x5d   :  { %360 = vmatpush1.bf16.msra.mxu0 %v1941_v3  ;;  %v1957_v16 = vld [vmem:[#allocation6 + $0x4] ss:$8 sps:$4 sm:$0xff]   ;;  %v152_v17 = vpack.c.bf16 %v150_v14, %v148_v13  ;;  %v1984_v18 = vld [vmem:[#allocation8 + $0x74] ss:$8 sps:$4 sm:$0xff]   ;;  %v1986_v19 = vld [vmem:[#allocation8 + $0x70] ss:$8 sps:$4 sm:$0xff]  }
  0x5e   :  { %361 = vmatprep.subr.bf16.mxu0 %v1942_v4  ;;  %v1987_v20 = vld [vmem:[#allocation8 + $0x64] ss:$8 sps:$4 sm:$0xff]   ;;  %610 = vmatprep.subr.bf16.mxu1 %v1984_v18  ;;  %v1989_v21 = vld [vmem:[#allocation8 + $0x60] ss:$8 sps:$4 sm:$0xff]   ;;  %v1990_v23 = vld [vmem:[#allocation8 + $0x54] ss:$8 sps:$4 sm:$0xff]  }
  0x5f   :  { %389 = vmatprep.mubr.bf16.mxu0 %v152_v17  ;;  %611 = vmatpush1.bf16.msra.mxu1 %v1986_v19  ;;  %v1959_v22 = vld [vmem:[#allocation6] ss:$8 sps:$4 sm:$0xff]   ;;  %v1960_v24 = vld [vmem:[#allocation6 + $0xf4] ss:$8 sps:$4 sm:$0xff]   ;;  %v1992_v25 = vld [vmem:[#allocation8 + $0x50] ss:$8 sps:$4 sm:$0xff]  }
  0x60   :  { %612 = vmatprep.subr.bf16.mxu1 %v1987_v20  ;;  %v1962_v26 = vld [vmem:[#allocation6 + $0xf0] ss:$8 sps:$4 sm:$0xff]   ;;  %v1993_v27 = vld [vmem:[#allocation8 + $0x44] ss:$8 sps:$4 sm:$0xff]   ;;  %v1965_v29 = vld [vmem:[#allocation6 + $0xe0] ss:$8 sps:$4 sm:$0xff]  }
  0x61   :  { %362 = vmatpush1.bf16.msra.mxu0 %v1944_v5  ;;  %v1963_v28 = vld [vmem:[#allocation6 + $0xe4] ss:$8 sps:$4 sm:$0xff]   ;;  %v1995_v30 = vld [vmem:[#allocation8 + $0x40] ss:$8 sps:$4 sm:$0xff]   ;;  %v1966_v31 = vld [vmem:[#allocation6 + $0xd4] ss:$8 sps:$4 sm:$0xff]  }
  0x62   :  { %363 = vmatprep.subr.bf16.mxu0 %v1945_v6  ;;  %v1996_v32 = vld [vmem:[#allocation8 + $0x34] ss:$8 sps:$4 sm:$0xff]   ;;  %v1998_v33 = vld [vmem:[#allocation8 + $0x30] ss:$8 sps:$4 sm:$0xff]   ;;  %v1999_v35 = vld [vmem:[#allocation8 + $0x24] ss:$8 sps:$4 sm:$0xff]  }
  0x63   :  { %613 = vmatpush1.bf16.msra.mxu1 %v1989_v21  ;;  %v1968_v34 = vld [vmem:[#allocation6 + $0xd0] ss:$8 sps:$4 sm:$0xff]   ;;  %v1969_v36 = vld [vmem:[#allocation6 + $0xc4] ss:$8 sps:$4 sm:$0xff]   ;;  %v2001_v37 = vld [vmem:[#allocation8 + $0x20] ss:$8 sps:$4 sm:$0xff]  }
  0x64   :  { %614 = vmatprep.subr.bf16.mxu1 %v1990_v23  ;;  %v1971_v38 = vld [vmem:[#allocation6 + $0xc0] ss:$8 sps:$4 sm:$0xff]   ;;  %v2002_v39 = vld [vmem:[#allocation8 + $0x14] ss:$8 sps:$4 sm:$0xff]   ;;  %v2004_v41 = vld [vmem:[#allocation8 + $0x10] ss:$8 sps:$4 sm:$0xff]  }
  0x65   :  { %364 = vmatpush1.bf16.msra.mxu0 %v1947_v7  ;;  %v1972_v40 = vld [vmem:[#allocation6 + $0xb4] ss:$8 sps:$4 sm:$0xff]   ;;  %v1974_v42 = vld [vmem:[#allocation6 + $0xb0] ss:$8 sps:$4 sm:$0xff]   ;;  %v2005_v43 = vld [vmem:[#allocation8 + $0x4] ss:$8 sps:$4 sm:$0xff]  }
  0x66   :  { %365 = vmatprep.subr.bf16.mxu0 %v1948_v8  ;;  %v1975_v44 = vld [vmem:[#allocation6 + $0xa4] ss:$8 sps:$4 sm:$0xff]   ;;  %v2007_v45 = vld [vmem:[#allocation8] ss:$8 sps:$4 sm:$0xff]   ;;  %v2008_v47 = vld [vmem:[#allocation8 + $0xf4] ss:$8 sps:$4 sm:$0xff]  }
  0x67   :  { %615 = vmatpush1.bf16.msra.mxu1 %v1992_v25  ;;  %v1977_v46 = vld [vmem:[#allocation6 + $0xa0] ss:$8 sps:$4 sm:$0xff]   ;;  %v1978_v48 = vld [vmem:[#allocation6 + $0x94] ss:$8 sps:$4 sm:$0xff]   ;;  %v2010_v49 = vld [vmem:[#allocation8 + $0xf0] ss:$8 sps:$4 sm:$0xff]  }
  0x68   :  { %616 = vmatprep.subr.bf16.mxu1 %v1993_v27  ;;  %v1980_v50 = vld [vmem:[#allocation6 + $0x90] ss:$8 sps:$4 sm:$0xff]   ;;  %v2011_v51 = vld [vmem:[#allocation8 + $0xe4] ss:$8 sps:$4 sm:$0xff]   ;;  %v2013_v53 = vld [vmem:[#allocation8 + $0xe0] ss:$8 sps:$4 sm:$0xff]  }
  0x69   :  { %366 = vmatpush1.bf16.msra.mxu0 %v1950_v9  ;;  %v1981_v52 = vld [vmem:[#allocation6 + $0x84] ss:$8 sps:$4 sm:$0xff]   ;;  %v1983_v54 = vld [vmem:[#allocation6 + $0x80] ss:$8 sps:$4 sm:$0xff]   ;;  %v149_v56 = vld [vmem:[#allocation3 + $0x10] sm:$0xff] }
  0x6a   :  { %367 = vmatprep.subr.bf16.mxu0 %v1951_v10  ;;  %v151_v57 = vpack.c.bf16 %v149_v56, %v147_v55  ;;  %v2014_v58 = vld [vmem:[#allocation8 + $0xd4] ss:$8 sps:$4 sm:$0xff]   ;;  %v2016_v59 = vld [vmem:[#allocation8 + $0xd0] ss:$8 sps:$4 sm:$0xff]   ;;  %v2017_v60 = vld [vmem:[#allocation8 + $0xc4] ss:$8 sps:$4 sm:$0xff]  }
  0x6b   :  { %617 = vmatpush1.bf16.msra.mxu1 %v1995_v30  ;;  %v2019_v61 = vld [vmem:[#allocation8 + $0xc0] ss:$8 sps:$4 sm:$0xff]   ;;  %v2020_v62 = vld [vmem:[#allocation8 + $0xb4] ss:$8 sps:$4 sm:$0xff]   ;;  %v2022_v63 = vld [vmem:[#allocation8 + $0xb0] ss:$8 sps:$4 sm:$0xff]  }
  0x6c   :  { %618 = vmatprep.subr.bf16.mxu1 %v1996_v32  ;;  %v2023_v0 = vld [vmem:[#allocation8 + $0xa4] ss:$8 sps:$4 sm:$0xff]   ;;  %v2025_v1 = vld [vmem:[#allocation8 + $0xa0] ss:$8 sps:$4 sm:$0xff]   ;;  %v2026_v2 = vld [vmem:[#allocation8 + $0x94] ss:$8 sps:$4 sm:$0xff]  }
  0x6d   :  { %368 = vmatpush1.bf16.msra.mxu0 %v1953_v11  ;;  %v2028_v3 = vld [vmem:[#allocation8 + $0x90] ss:$8 sps:$4 sm:$0xff]   ;;  %v2029_v4 = vld [vmem:[#allocation8 + $0x84] ss:$8 sps:$4 sm:$0xff]   ;;  %v2031_v5 = vld [vmem:[#allocation8 + $0x80] ss:$8 sps:$4 sm:$0xff]  }
  0x6e   :  { %369 = vmatprep.subr.bf16.mxu0 %v1954_v12  ;;  %v2032_v6 = vld [vmem:[#allocation9 + $0x70] ss:$8 sps:$4 sm:$0xff]   ;;  %v2034_v7 = vld [vmem:[#allocation9 + $0x74] ss:$8 sps:$4 sm:$0xff]   ;;  %v2037_v8 = vld [vmem:[#allocation9 + $0x64] ss:$8 sps:$4 sm:$0xff]  }
  0x6f   :  { %619 = vmatpush1.bf16.msra.mxu1 %v1998_v33  ;;  %v2035_v9 = vld [vmem:[#allocation9 + $0x60] ss:$8 sps:$4 sm:$0xff]   ;;  %v2040_v10 = vld [vmem:[#allocation9 + $0x54] ss:$8 sps:$4 sm:$0xff]   ;;  %v2038_v11 = vld [vmem:[#allocation9 + $0x50] ss:$8 sps:$4 sm:$0xff]  }
  0x70   :  { %620 = vmatprep.subr.bf16.mxu1 %v1999_v35  ;;  %v2043_v12 = vld [vmem:[#allocation9 + $0x44] ss:$8 sps:$4 sm:$0xff]   ;;  %v2041_v13 = vld [vmem:[#allocation9 + $0x40] ss:$8 sps:$4 sm:$0xff]   ;;  %v2046_v14 = vld [vmem:[#allocation9 + $0x34] ss:$8 sps:$4 sm:$0xff]  }
  0x71   :  { %370 = vmatpush1.bf16.msra.mxu0 %v1956_v15  ;;  %v2044_v15 = vld [vmem:[#allocation9 + $0x30] ss:$8 sps:$4 sm:$0xff]   ;;  %v2047_v17 = vld [vmem:[#allocation9 + $0x20] ss:$8 sps:$4 sm:$0xff]   ;;  %v2052_v18 = vld [vmem:[#allocation9 + $0x14] ss:$8 sps:$4 sm:$0xff]  }
  0x72   :  { %371 = vmatprep.subr.bf16.mxu0 %v1957_v16  ;;  %v2049_v16 = vld [vmem:[#allocation9 + $0x24] ss:$8 sps:$4 sm:$0xff]   ;;  %v2050_v19 = vld [vmem:[#allocation9 + $0x10] ss:$8 sps:$4 sm:$0xff]   ;;  %v2053_v21 = vld [vmem:[#allocation9] ss:$8 sps:$4 sm:$0xff]  }
  0x73   :  { %621 = vmatpush1.bf16.msra.mxu1 %v2001_v37  ;;  %v2055_v20 = vld [vmem:[#allocation9 + $0x4] ss:$8 sps:$4 sm:$0xff]   ;;  %v2056_v23 = vld [vmem:[#allocation9 + $0xf0] ss:$8 sps:$4 sm:$0xff]   ;;  %v2059_v25 = vld [vmem:[#allocation9 + $0xe0] ss:$8 sps:$4 sm:$0xff]  }
  0x74   :  { %622 = vmatprep.subr.bf16.mxu1 %v2002_v39  ;;  %v2076_v55 = vld [vmem:[#allocation9 + $0x94] ss:$8 sps:$4 sm:$0xff]   ;;  %v2074_v56 = vld [vmem:[#allocation9 + $0x90] ss:$8 sps:$4 sm:$0xff]  }
  0x75   :  { %372 = vmatpush1.bf16.msra.mxu0 %v1959_v22  ;;  %v2058_v22 = vld [vmem:[#allocation9 + $0xf4] ss:$8 sps:$4 sm:$0xff]  }
  0x76   :  { %373 = vmatprep.subr.bf16.mxu0 %v1960_v24  ;;  %v2061_v24 = vld [vmem:[#allocation9 + $0xe4] ss:$8 sps:$4 sm:$0xff]  }
  0x77   :  { %623 = vmatpush1.bf16.msra.mxu1 %v2004_v41 }
  0x78   :  { %624 = vmatprep.subr.bf16.mxu1 %v2005_v43 }
  0x79   :  { %374 = vmatpush2.bf16.msra.mxu0 %v1962_v26  ;;  %v187_v26 = vlaneseq }
  0x7a   :  { %375 = vmatprep.subr.bf16.mxu0 %v1963_v28 }
  0x7b   :  { %625 = vmatpush1.bf16.msra.mxu1 %v2007_v45  ;;  %v188_v27 = vshrl.u32 %v187_v26, 7  ;;  %v2103_v26 = vld [vmem:[#allocation11 + $0x4] ss:$8 sps:$4 sm:$0xff]  }
  0x7c   :  { %626 = vmatprep.subr.bf16.mxu1 %v2008_v47  ;;  %v2064_v47 = vld [vmem:[#allocation9 + $0xd4] ss:$8 sps:$4 sm:$0xff]  }
  0x7d   :  { %376 = vmatpush2.bf16.msra.mxu0 %v1965_v29  ;;  %v2587_v28 = vsub.s32 1, %v188_v27  ;;  %v185_v29 = vld [vmem:[%s2638_s2] sm:$0x3]  ;;  %v2592_v30 = vsub.s32 0, %v188_v27 }
  0x7e   :  { %377 = vmatprep.subr.bf16.mxu0 %v1966_v31  ;;  %v2101_v27 = vld [vmem:[#allocation11] ss:$8 sps:$4 sm:$0xff]  }
  0x7f   :  { %627 = vmatpush2.bf16.msra.mxu1 %v2010_v49  ;;  %v194_v31 = vrot.slane %v185_v29, %v2587_v28  ;;  %v190_v33 = vrot.slane %v185_v29, %v2592_v30  ;;  %v2067_v49 = vld [vmem:[#allocation9 + $0xc4] ss:$8 sps:$4 sm:$0xff]   ;;  %v2106_v29 = vld [vmem:[#allocation11 + $0xf4] ss:$8 sps:$4 sm:$0xff]  }
  0x80   :  { %628 = vmatprep.subr.bf16.mxu1 %v2011_v51  ;;  %v2070_v51 = vld [vmem:[#allocation9 + $0xb4] ss:$8 sps:$4 sm:$0xff]  }
  0x81   :  { %378 = vmatpush2.bf16.msra.mxu0 %v1968_v34 }
  0x82   :  { %379 = vmatprep.subr.bf16.mxu0 %v1969_v36 }
  0x83   :  { %629 = vmatpush2.bf16.msra.mxu1 %v2013_v53  ;;  %v2073_v53 = vld [vmem:[#allocation9 + $0xa4] ss:$8 sps:$4 sm:$0xff]  }
  0x84   :  { %630 = vmatprep.subr.bf16.mxu1 %v2014_v58  ;;  %v2077_v58 = vld [vmem:[#allocation9 + $0x80] ss:$8 sps:$4 sm:$0xff]  }
  0x85   :  { %380 = vmatpush2.bf16.msra.mxu0 %v1971_v38 }
  0x86   :  { %381 = vmatprep.subr.bf16.mxu0 %v1972_v40 }
  0x87   :  { %631 = vmatpush2.bf16.msra.mxu1 %v2016_v59  ;;  %v2080_v59 = vld [vmem:[#allocation11 + $0x70] ss:$8 sps:$4 sm:$0xff]  }
  0x88   :  { %632 = vmatprep.subr.bf16.mxu1 %v2017_v60  ;;  %v2082_v60 = vld [vmem:[#allocation11 + $0x74] ss:$8 sps:$4 sm:$0xff]  }
  0x89   :  { %382 = vmatpush2.bf16.msra.mxu0 %v1974_v42 }
  0x8a   :  { %383 = vmatprep.subr.bf16.mxu0 %v1975_v44 }
  0x8b   :  { %633 = vmatpush2.bf16.msra.mxu1 %v2019_v61  ;;  %v2085_v61 = vld [vmem:[#allocation11 + $0x64] ss:$8 sps:$4 sm:$0xff]  }
  0x8c   :  { %634 = vmatprep.subr.bf16.mxu1 %v2020_v62  ;;  %v2083_v62 = vld [vmem:[#allocation11 + $0x60] ss:$8 sps:$4 sm:$0xff]  }
  0x8d   :  { %384 = vmatpush2.bf16.msra.mxu0 %v1977_v46 }
  0x8e   :  { %385 = vmatprep.subr.bf16.mxu0 %v1978_v48  ;;  %v2062_v48 = vld [vmem:[#allocation9 + $0xd0] ss:$8 sps:$4 sm:$0xff]  }
  0x8f   :  { %635 = vmatpush2.bf16.msra.mxu1 %v2022_v63  ;;  %v2088_v63 = vld [vmem:[#allocation11 + $0x54] ss:$8 sps:$4 sm:$0xff]  }
  0x90   :  { %636 = vmatprep.subr.bf16.mxu1 %v2023_v0  ;;  %v2086_v0 = vld [vmem:[#allocation11 + $0x50] ss:$8 sps:$4 sm:$0xff]  }
  0x91   :  { %386 = vmatpush2.bf16.msra.mxu0 %v1980_v50  ;;  %v2065_v50 = vld [vmem:[#allocation9 + $0xc0] ss:$8 sps:$4 sm:$0xff]  }
  0x92   :  { %387 = vmatprep.subr.bf16.mxu0 %v1981_v52  ;;  %v2068_v52 = vld [vmem:[#allocation9 + $0xb0] ss:$8 sps:$4 sm:$0xff]  }
  0x93   :  { %637 = vmatpush2.bf16.msra.mxu1 %v2025_v1  ;;  %v2091_v1 = vld [vmem:[#allocation11 + $0x44] ss:$8 sps:$4 sm:$0xff]  }
  0x94   :  { %638 = vmatprep.subr.bf16.mxu1 %v2026_v2  ;;  %v2089_v2 = vld [vmem:[#allocation11 + $0x40] ss:$8 sps:$4 sm:$0xff]  }
  0x95   :  { %388 = vmatpush2.bf16.msra.mxu0 %v1983_v54  ;;  %v2071_v54 = vld [vmem:[#allocation9 + $0xa0] ss:$8 sps:$4 sm:$0xff]  }
  0x96   :  { %863 = vmatprep.subr.bf16.mxu0 %v2034_v7 }
  0x97   :  { %639 = vmatpush2.bf16.msra.mxu1 %v2028_v3  ;;  %v438_v3 = vld [vmem:[%s2640_s4] sm:$0x3] }
  0x98   :  { %390 = vmatmul.mubr.bf16.vlgmr.msra.gmra.mxu0 %v151_v57  ;;  %640 = vmatprep.subr.bf16.mxu1 %v2029_v4  ;;  %v2079_v57 = vld [vmem:[#allocation9 + $0x84] ss:$8 sps:$4 sm:$0xff]   ;;  %v447_v4 = vrot.slane %v438_v3, %v2587_v28 }
  0x99   :  { %864 = vmatpush1.bf16.msra.mxu0 %v2032_v6  ;;  %v443_v6 = vrot.slane %v438_v3, %v2592_v30 }
  0x9a   :  { %865 = vmatprep.subr.bf16.mxu0 %v2037_v8 }
  0x9b   :  { %641 = vmatpush2.bf16.msra.mxu1 %v2031_v5 }
  0x9c   :  { %1142 = vmatprep.subr.bf16.mxu1 %v2082_v60  ;;  %v2151_v60 = vld [vmem:[#allocation12 + $0x4] ss:$8 sps:$4 sm:$0xff]  }
  0x9d   :  { %866 = vmatpush1.bf16.msra.mxu0 %v2035_v9 }
  0x9e   :  { %867 = vmatprep.subr.bf16.mxu0 %v2040_v10 }
  0xa1   :  { %868 = vmatpush1.bf16.msra.mxu0 %v2038_v11 }
  0xa2   :  { %869 = vmatprep.subr.bf16.mxu0 %v2043_v12 }
  0xa5   :  { %870 = vmatpush1.bf16.msra.mxu0 %v2041_v13 }
  0xa6   :  { %871 = vmatprep.subr.bf16.mxu0 %v2046_v14 }
  0xa9   :  { %872 = vmatpush1.bf16.msra.mxu0 %v2044_v15 }
  0xaa   :  { %873 = vmatprep.subr.bf16.mxu0 %v2049_v16 }
  0xad   :  { %874 = vmatpush1.bf16.msra.mxu0 %v2047_v17 }
  0xae   :  { %875 = vmatprep.subr.bf16.mxu0 %v2052_v18 }
  0xb1   :  { %876 = vmatpush1.bf16.msra.mxu0 %v2050_v19 }
  0xb2   :  { %877 = vmatprep.subr.bf16.mxu0 %v2055_v20  ;;  %v2094_v20 = vld [vmem:[#allocation11 + $0x34] ss:$8 sps:$4 sm:$0xff]  }
  0xb5   :  { %878 = vmatpush1.bf16.msra.mxu0 %v2053_v21  ;;  %v2092_v21 = vld [vmem:[#allocation11 + $0x30] ss:$8 sps:$4 sm:$0xff]  }
  0xb6   :  { %879 = vmatprep.subr.bf16.mxu0 %v2058_v22  ;;  %v2097_v22 = vld [vmem:[#allocation11 + $0x24] ss:$8 sps:$4 sm:$0xff]  }
  0xb9   :  { %880 = vmatpush2.bf16.msra.mxu0 %v2056_v23  ;;  %v2095_v23 = vld [vmem:[#allocation11 + $0x20] ss:$8 sps:$4 sm:$0xff]  }
  0xba   :  { %881 = vmatprep.subr.bf16.mxu0 %v2061_v24  ;;  %v2100_v24 = vld [vmem:[#allocation11 + $0x14] ss:$8 sps:$4 sm:$0xff]  }
  0xbd   :  { %882 = vmatpush2.bf16.msra.mxu0 %v2059_v25  ;;  %v2098_v25 = vld [vmem:[#allocation11 + $0x10] ss:$8 sps:$4 sm:$0xff]  }
  0xbe   :  { %883 = vmatprep.subr.bf16.mxu0 %v2064_v47  ;;  %v2130_v47 = vld [vmem:[#allocation12 + $0x74] ss:$8 sps:$4 sm:$0xff]  }
  0xc1   :  { %884 = vmatpush2.bf16.msra.mxu0 %v2062_v48  ;;  %v2133_v48 = vld [vmem:[#allocation12 + $0x64] ss:$8 sps:$4 sm:$0xff]  }
  0xc2   :  { %885 = vmatprep.subr.bf16.mxu0 %v2067_v49  ;;  %v2131_v49 = vld [vmem:[#allocation12 + $0x60] ss:$8 sps:$4 sm:$0xff]  }
  0xc5   :  { %886 = vmatpush2.bf16.msra.mxu0 %v2065_v50  ;;  %v2136_v50 = vld [vmem:[#allocation12 + $0x54] ss:$8 sps:$4 sm:$0xff]  }
  0xc6   :  { %887 = vmatprep.subr.bf16.mxu0 %v2070_v51  ;;  %v2134_v51 = vld [vmem:[#allocation12 + $0x50] ss:$8 sps:$4 sm:$0xff]  }
  0xc9   :  { %888 = vmatpush2.bf16.msra.mxu0 %v2068_v52  ;;  %v2139_v52 = vld [vmem:[#allocation12 + $0x44] ss:$8 sps:$4 sm:$0xff]  }
  0xca   :  { %889 = vmatprep.subr.bf16.mxu0 %v2073_v53  ;;  %v2137_v53 = vld [vmem:[#allocation12 + $0x40] ss:$8 sps:$4 sm:$0xff]  }
  0xcd   :  { %890 = vmatpush2.bf16.msra.mxu0 %v2071_v54  ;;  %v2142_v54 = vld [vmem:[#allocation12 + $0x34] ss:$8 sps:$4 sm:$0xff]  }
  0xce   :  { %891 = vmatprep.subr.bf16.mxu0 %v2076_v55  ;;  %v2140_v55 = vld [vmem:[#allocation12 + $0x30] ss:$8 sps:$4 sm:$0xff]  }
  0xd1   :  { %892 = vmatpush2.bf16.msra.mxu0 %v2074_v56  ;;  %v2145_v56 = vld [vmem:[#allocation12 + $0x24] ss:$8 sps:$4 sm:$0xff]  }
  0xd2   :  { %893 = vmatprep.subr.bf16.mxu0 %v2079_v57  ;;  %v2143_v57 = vld [vmem:[#allocation12 + $0x20] ss:$8 sps:$4 sm:$0xff]  }
  0xd5   :  { %894 = vmatpush2.bf16.msra.mxu0 %v2077_v58  ;;  %v2148_v58 = vld [vmem:[#allocation12 + $0x14] ss:$8 sps:$4 sm:$0xff]  }
  0xd6   :  { %1395 = vmatprep.subr.bf16.mxu0 %v2130_v47  ;;  %v2170_v47 = vld [vmem:[#allocation12 + $0x90] ss:$8 sps:$4 sm:$0xff]  }
 0x158   :  { %v391_v32 = vpop.f32.mrf.mxu0 }
 0x159   :  { %v392_v38 = vadd.f32 %v391_v32, %v190_v33  ;;  %v2109_v32 = vld [vmem:[#allocation11 + $0xe4] ss:$8 sps:$4 sm:$0xff]  }
 0x15a   :  { %v393_v34 = vpop.f32.mrf.mxu0 }
 0x15b   :  { %v394_v35 = vadd.f32 %v393_v34, %v194_v31  ;;  %v2112_v34 = vld [vmem:[#allocation11 + $0xd4] ss:$8 sps:$4 sm:$0xff]  }
 0x15c   :  { %v395_v36 = vpop.f32.mrf.mxu0 }
 0x15d   :  { %v396_v37 = vadd.f32 %v395_v36, %v190_v33  ;;  %2224 = vtanh.f32 %v394_v35  ;;  %v2107_v33 = vld [vmem:[#allocation11 + $0xe0] ss:$8 sps:$4 sm:$0xff]   ;;  %v2110_v35 = vld [vmem:[#allocation11 + $0xd0] ss:$8 sps:$4 sm:$0xff]   ;;  %v2115_v36 = vld [vmem:[#allocation11 + $0xc4] ss:$8 sps:$4 sm:$0xff]  }
 0x15e   :  { %v397_v39 = vpop.f32.mrf.mxu0 }
 0x15f   :  { %v398_v40 = vadd.f32 %v397_v39, %v194_v31  ;;  %2226 = vtanh.f32 %v396_v37  ;;  %v2104_v31 = vld [vmem:[#allocation11 + $0xf0] ss:$8 sps:$4 sm:$0xff]   ;;  %v2113_v37 = vld [vmem:[#allocation11 + $0xc0] ss:$8 sps:$4 sm:$0xff]  }
 0x160   :  { %v2116_v39 = vld [vmem:[#allocation11 + $0xb0] ss:$8 sps:$4 sm:$0xff]  }
 0x161   :  { %2228 = vtanh.f32 %v398_v40  ;;  %v2121_v40 = vld [vmem:[#allocation11 + $0xa4] ss:$8 sps:$4 sm:$0xff]  }
 0x162   :  { %2230 = vtanh.f32 %v392_v38  ;;  %v2118_v38 = vld [vmem:[#allocation11 + $0xb4] ss:$8 sps:$4 sm:$0xff]  }
 0x16a   :  { %v2225_v41 = vpop.eup %2224 }
 0x16c   :  { %v2227_v42 = vpop.eup %2226 }
 0x16e   :  { %v2229_v43 = vpop.eup %2228 }
 0x16f   :  { %v2231_v44 = vpop.eup %2230  ;;  %v405_v45 = vpack.c.bf16 %v2229_v43, %v2225_v41  ;;  %v2119_v41 = vld [vmem:[#allocation11 + $0xa0] ss:$8 sps:$4 sm:$0xff]   ;;  %v2122_v43 = vld [vmem:[#allocation11 + $0x90] ss:$8 sps:$4 sm:$0xff]  }
 0x170   :  { %v404_v46 = vpack.c.bf16 %v2227_v42, %v2231_v44  ;;  %v2124_v42 = vld [vmem:[#allocation11 + $0x94] ss:$8 sps:$4 sm:$0xff]   ;;  %v2127_v44 = vld [vmem:[#allocation11 + $0x84] ss:$8 sps:$4 sm:$0xff]  }
 0x171   :  { %642 = vmatprep.mubr.bf16.mxu1 %v405_v45  ;;  %v2125_v45 = vld [vmem:[#allocation11 + $0x80] ss:$8 sps:$4 sm:$0xff]  }
 0x172   :  { %643 = vmatmul.mubr.bf16.vlgmr.msra.gmra.mxu1 %v404_v46  ;;  %v2128_v46 = vld [vmem:[#allocation12 + $0x70] ss:$8 sps:$4 sm:$0xff]  }
 0x173   :  { %1143 = vmatpush1.bf16.msra.mxu1 %v2080_v59  ;;  %v2146_v59 = vld [vmem:[#allocation12 + $0x10] ss:$8 sps:$4 sm:$0xff]  }
 0x174   :  { %1144 = vmatprep.subr.bf16.mxu1 %v2085_v61  ;;  %v2149_v61 = vld [vmem:[#allocation12] ss:$8 sps:$4 sm:$0xff]  }
 0x177   :  { %1145 = vmatpush1.bf16.msra.mxu1 %v2083_v62  ;;  %v2154_v62 = vld [vmem:[#allocation12 + $0xf4] ss:$8 sps:$4 sm:$0xff]  }
 0x178   :  { %1146 = vmatprep.subr.bf16.mxu1 %v2088_v63  ;;  %v2152_v63 = vld [vmem:[#allocation12 + $0xf0] ss:$8 sps:$4 sm:$0xff]  }
 0x17b   :  { %1147 = vmatpush1.bf16.msra.mxu1 %v2086_v0  ;;  %v2157_v0 = vld [vmem:[#allocation12 + $0xe4] ss:$8 sps:$4 sm:$0xff]  }
 0x17c   :  { %1148 = vmatprep.subr.bf16.mxu1 %v2091_v1  ;;  %v2155_v1 = vld [vmem:[#allocation12 + $0xe0] ss:$8 sps:$4 sm:$0xff]  }
 0x17f   :  { %1149 = vmatpush1.bf16.msra.mxu1 %v2089_v2  ;;  %v691_v2 = vld [vmem:[%s2642_s6] sm:$0x3] }
 0x180   :  { %1150 = vmatprep.subr.bf16.mxu1 %v2094_v20  ;;  %v696_v3 = vrot.slane %v691_v2, %v2592_v30 }
 0x183   :  { %1151 = vmatpush1.bf16.msra.mxu1 %v2092_v21  ;;  %v917_v21 = vstv %s2649_s13 }
 0x184   :  { %1152 = vmatprep.subr.bf16.mxu1 %v2097_v22 }
 0x187   :  { %1153 = vmatpush1.bf16.msra.mxu1 %v2095_v23 }
 0x188   :  { %1154 = vmatprep.subr.bf16.mxu1 %v2100_v24 }
 0x18b   :  { %1155 = vmatpush1.bf16.msra.mxu1 %v2098_v25 }
 0x18c   :  { %1156 = vmatprep.subr.bf16.mxu1 %v2103_v26 }
 0x18f   :  { %1157 = vmatpush1.bf16.msra.mxu1 %v2101_v27 }
 0x190   :  { %1158 = vmatprep.subr.bf16.mxu1 %v2106_v29 }
 0x193   :  { %1159 = vmatpush2.bf16.msra.mxu1 %v2104_v31 }
 0x194   :  { %1160 = vmatprep.subr.bf16.mxu1 %v2109_v32 }
 0x197   :  { %1161 = vmatpush2.bf16.msra.mxu1 %v2107_v33 }
 0x198   :  { %1162 = vmatprep.subr.bf16.mxu1 %v2112_v34 }
 0x19b   :  { %1163 = vmatpush2.bf16.msra.mxu1 %v2110_v35 }
 0x19c   :  { %1164 = vmatprep.subr.bf16.mxu1 %v2115_v36 }
 0x19f   :  { %1165 = vmatpush2.bf16.msra.mxu1 %v2113_v37 }
 0x1a0   :  { %1166 = vmatprep.subr.bf16.mxu1 %v2118_v38  ;;  %v2160_v38 = vld [vmem:[#allocation12 + $0xd4] ss:$8 sps:$4 sm:$0xff]  }
 0x1a3   :  { %1167 = vmatpush2.bf16.msra.mxu1 %v2116_v39  ;;  %v2158_v39 = vld [vmem:[#allocation12 + $0xd0] ss:$8 sps:$4 sm:$0xff]  }
 0x1a4   :  { %1168 = vmatprep.subr.bf16.mxu1 %v2121_v40  ;;  %v2163_v40 = vld [vmem:[#allocation12 + $0xc4] ss:$8 sps:$4 sm:$0xff]  }
 0x1a7   :  { %1169 = vmatpush2.bf16.msra.mxu1 %v2119_v41  ;;  %v2161_v41 = vld [vmem:[#allocation12 + $0xc0] ss:$8 sps:$4 sm:$0xff]  }
 0x1a8   :  { %1170 = vmatprep.subr.bf16.mxu1 %v2124_v42  ;;  %v2166_v42 = vld [vmem:[#allocation12 + $0xb4] ss:$8 sps:$4 sm:$0xff]  }
 0x1ab   :  { %1171 = vmatpush2.bf16.msra.mxu1 %v2122_v43  ;;  %v2164_v43 = vld [vmem:[#allocation12 + $0xb0] ss:$8 sps:$4 sm:$0xff]  }
 0x1ac   :  { %1172 = vmatprep.subr.bf16.mxu1 %v2127_v44  ;;  %v2169_v44 = vld [vmem:[#allocation12 + $0xa4] ss:$8 sps:$4 sm:$0xff]  }
 0x1af   :  { %1173 = vmatpush2.bf16.msra.mxu1 %v2125_v45  ;;  %v2167_v45 = vld [vmem:[#allocation12 + $0xa0] ss:$8 sps:$4 sm:$0xff]  }
 0x232   :  { %v644_v5 = vpop.f32.mrf.mxu1 }
 0x233   :  { %v645_v11 = vadd.f32 %v644_v5, %v443_v6 }
 0x234   :  { %v646_v7 = vpop.f32.mrf.mxu1 }
 0x235   :  { %v647_v8 = vadd.f32 %v646_v7, %v447_v4 }
 0x236   :  { %v648_v9 = vpop.f32.mrf.mxu1 }
 0x237   :  { %v649_v10 = vadd.f32 %v648_v9, %v443_v6  ;;  %2232 = vtanh.f32 %v647_v8 }
 0x238   :  { %v650_v12 = vpop.f32.mrf.mxu1 }
 0x239   :  { %v651_v13 = vadd.f32 %v650_v12, %v447_v4  ;;  %2234 = vtanh.f32 %v649_v10  ;;  %v700_v4 = vrot.slane %v691_v2, %v2587_v28  ;;  %v2202_v2 = vld [vmem:[#allocation14 + $0xf4] ss:$8 sps:$4 sm:$0xff]  }
 0x23b   :  { %2236 = vtanh.f32 %v651_v13 }
 0x23c   :  { %2238 = vtanh.f32 %v645_v11 }
 0x244   :  { %v2233_v14 = vpop.eup %2232 }
 0x246   :  { %v2235_v15 = vpop.eup %2234 }
 0x248   :  { %v2237_v16 = vpop.eup %2236 }
 0x249   :  { %v2239_v17 = vpop.eup %2238  ;;  %v658_v18 = vpack.c.bf16 %v2237_v16, %v2233_v14 }
 0x24a   :  { %v657_v19 = vpack.c.bf16 %v2235_v15, %v2239_v17 }
 0x24b   :  { %895 = vmatprep.mubr.bf16.mxu0 %v658_v18 }
 0x24c   :  { %896 = vmatmul.mubr.bf16.vlgmr.msra.gmra.mxu0 %v657_v19 }
 0x24d   :  { %1396 = vmatpush1.bf16.msra.mxu0 %v2128_v46  ;;  %v2172_v46 = vld [vmem:[#allocation12 + $0x94] ss:$8 sps:$4 sm:$0xff]  }
 0x24e   :  { %1397 = vmatprep.subr.bf16.mxu0 %v2133_v48  ;;  %v2175_v48 = vld [vmem:[#allocation12 + $0x84] ss:$8 sps:$4 sm:$0xff]  }
 0x251   :  { %1398 = vmatpush1.bf16.msra.mxu0 %v2131_v49  ;;  %v2173_v49 = vld [vmem:[#allocation12 + $0x80] ss:$8 sps:$4 sm:$0xff]  }
 0x252   :  { %1399 = vmatprep.subr.bf16.mxu0 %v2136_v50  ;;  %v2176_v50 = vld [vmem:[#allocation14 + $0x70] ss:$8 sps:$4 sm:$0xff]  }
 0x255   :  { %1400 = vmatpush1.bf16.msra.mxu0 %v2134_v51  ;;  %v2178_v51 = vld [vmem:[#allocation14 + $0x74] ss:$8 sps:$4 sm:$0xff]  }
 0x256   :  { %1401 = vmatprep.subr.bf16.mxu0 %v2139_v52  ;;  %v2181_v52 = vld [vmem:[#allocation14 + $0x64] ss:$8 sps:$4 sm:$0xff]   ;;  %1648 = vmatprep.subr.bf16.mxu1 %v2178_v51 }
 0x259   :  { %1402 = vmatpush1.bf16.msra.mxu0 %v2137_v53  ;;  %v2179_v53 = vld [vmem:[#allocation14 + $0x60] ss:$8 sps:$4 sm:$0xff]  }
 0x25a   :  { %1403 = vmatprep.subr.bf16.mxu0 %v2142_v54  ;;  %v2184_v54 = vld [vmem:[#allocation14 + $0x54] ss:$8 sps:$4 sm:$0xff]  }
 0x25d   :  { %1404 = vmatpush1.bf16.msra.mxu0 %v2140_v55  ;;  %v2182_v55 = vld [vmem:[#allocation14 + $0x50] ss:$8 sps:$4 sm:$0xff]  }
 0x25e   :  { %1405 = vmatprep.subr.bf16.mxu0 %v2145_v56  ;;  %v2187_v56 = vld [vmem:[#allocation14 + $0x44] ss:$8 sps:$4 sm:$0xff]  }
 0x261   :  { %1406 = vmatpush1.bf16.msra.mxu0 %v2143_v57  ;;  %v2185_v57 = vld [vmem:[#allocation14 + $0x40] ss:$8 sps:$4 sm:$0xff]  }
 0x262   :  { %1407 = vmatprep.subr.bf16.mxu0 %v2148_v58  ;;  %v2190_v58 = vld [vmem:[#allocation14 + $0x34] ss:$8 sps:$4 sm:$0xff]  }
 0x265   :  { %1408 = vmatpush1.bf16.msra.mxu0 %v2146_v59  ;;  %v2188_v59 = vld [vmem:[#allocation14 + $0x30] ss:$8 sps:$4 sm:$0xff]  }
 0x266   :  { %1409 = vmatprep.subr.bf16.mxu0 %v2151_v60  ;;  %v2193_v60 = vld [vmem:[#allocation14 + $0x24] ss:$8 sps:$4 sm:$0xff]  }
 0x269   :  { %1410 = vmatpush1.bf16.msra.mxu0 %v2149_v61  ;;  %v2191_v61 = vld [vmem:[#allocation14 + $0x20] ss:$8 sps:$4 sm:$0xff]  }
 0x26a   :  { %1411 = vmatprep.subr.bf16.mxu0 %v2154_v62  ;;  %v2196_v62 = vld [vmem:[#allocation14 + $0x14] ss:$8 sps:$4 sm:$0xff]  }
 0x26d   :  { %1412 = vmatpush2.bf16.msra.mxu0 %v2152_v63  ;;  %v2194_v63 = vld [vmem:[#allocation14 + $0x10] ss:$8 sps:$4 sm:$0xff]  }
 0x26e   :  { %1413 = vmatprep.subr.bf16.mxu0 %v2157_v0  ;;  %v2199_v0 = vld [vmem:[#allocation14 + $0x4] ss:$8 sps:$4 sm:$0xff]  }
 0x271   :  { %1414 = vmatpush2.bf16.msra.mxu0 %v2155_v1  ;;  %v2197_v1 = vld [vmem:[#allocation14] ss:$8 sps:$4 sm:$0xff]  }
 0x272   :  { %1415 = vmatprep.subr.bf16.mxu0 %v2160_v38 }
 0x275   :  { %1416 = vmatpush2.bf16.msra.mxu0 %v2158_v39 }
 0x276   :  { %1417 = vmatprep.subr.bf16.mxu0 %v2163_v40 }
 0x279   :  { %1418 = vmatpush2.bf16.msra.mxu0 %v2161_v41 }
 0x27a   :  { %1419 = vmatprep.subr.bf16.mxu0 %v2166_v42 }
 0x27d   :  { %1420 = vmatpush2.bf16.msra.mxu0 %v2164_v43 }
 0x27e   :  { %1421 = vmatprep.subr.bf16.mxu0 %v2169_v44 }
 0x281   :  { %1422 = vmatpush2.bf16.msra.mxu0 %v2167_v45 }
 0x282   :  { %1423 = vmatprep.subr.bf16.mxu0 %v2172_v46 }
 0x285   :  { %1424 = vmatpush2.bf16.msra.mxu0 %v2170_v47 }
 0x286   :  { %1425 = vmatprep.subr.bf16.mxu0 %v2175_v48 }
 0x289   :  { %1426 = vmatpush2.bf16.msra.mxu0 %v2173_v49 }
 0x30c   :  { %v897_v5 = vpop.f32.mrf.mxu0 }
 0x30d   :  { %v898_v6 = vadd.f32 %v897_v5, %v696_v3  ;;  %v2203_v5 = vld [vmem:[#allocation14 + $0xe0] ss:$8 sps:$4 sm:$0xff]  }
 0x30e   :  { %v899_v7 = vpop.f32.mrf.mxu0 }
 0x30f   :  { %v900_v8 = vadd.f32 %v899_v7, %v700_v4  ;;  %v907_v10 = vmul.f32 %v898_v6, %v898_v6 }
 0x310   :  { %v901_v9 = vpop.f32.mrf.mxu0 }
 0x311   :  { %v909_v11 = vmul.f32 %v900_v8, %v900_v8  ;;  %v902_v12 = vadd.f32 %v901_v9, %v696_v3  ;;  %v2200_v3 = vld [vmem:[#allocation14 + $0xf0] ss:$8 sps:$4 sm:$0xff]  }
 0x312   :  { %v903_v13 = vpop.f32.mrf.mxu0 }
 0x313   :  { %v911_v14 = vadd.f32 %v909_v11, %v907_v10  ;;  %v904_v15 = vadd.f32 %v903_v13, %v700_v4  ;;  %v908_v17 = vmul.f32 %v902_v12, %v902_v12  ;;  %v2205_v4 = vld [vmem:[#allocation14 + $0xe4] ss:$8 sps:$4 sm:$0xff]  }
 0x315   :  { %v913_v16 = vmax.f32 %v911_v14, 1e-30  ;;  %v910_v18 = vmul.f32 %v904_v15, %v904_v15 }
 0x317   :  { %2240 = vrsqrt.f32 %v913_v16  ;;  %v912_v19 = vadd.f32 %v910_v18, %v908_v17 }
 0x319   :  { %v914_v20 = vmax.f32 %v912_v19, 1e-30 }
 0x31b   :  { %2242 = vrsqrt.f32 %v914_v20 }
 0x324   :  { %v2241_v22 = vpop.eup %2240 }
 0x325   :  { %v918_v23 = vmul.f32 %v2241_v22, %v917_v21 }
 0x327   :  { %v920_v24 = vsub.f32 1.0, %v918_v23  ;;  %v2208_v23 = vld [vmem:[#allocation14 + $0xd4] ss:$8 sps:$4 sm:$0xff]  }
 0x328   :  { %v2243_v25 = vpop.eup %2242 }
 0x329   :  { %v922_v26 = vmax.f32 %v920_v24, 0.0  ;;  %v919_v27 = vmul.f32 %v2243_v25, %v917_v21  ;;  %v2206_v24 = vld [vmem:[#allocation14 + $0xd0] ss:$8 sps:$4 sm:$0xff]   ;;  %v2211_v25 = vld [vmem:[#allocation14 + $0xc4] ss:$8 sps:$4 sm:$0xff]  }
 0x32b   :  { %v924_v29 = vmul.f32 %v922_v26, %v898_v6  ;;  %v928_v31 = vmul.f32 %v922_v26, %v900_v8  ;;  %v921_v32 = vsub.f32 1.0, %v919_v27  ;;  %v970_v6 = vld [vmem:[%s2644_s8] sm:$0x3]  ;;  %v2214_v27 = vld [vmem:[#allocation14 + $0xb4] ss:$8 sps:$4 sm:$0xff]  }
 0x32c   :  { %v979_v7 = vrot.slane %v970_v6, %v2587_v28  ;;  %v975_v9 = vrot.slane %v970_v6, %v2592_v30  ;;  %v2209_v26 = vld [vmem:[#allocation14 + $0xc0] ss:$8 sps:$4 sm:$0xff]  }
 0x32d   :  { %926 = vst [vmem:[#allocation16] sm:$0xff] %v924_v29  ;;  %930 = vst [vmem:[#allocation16 + $0x8] sm:$0xff] %v928_v31  ;;  %v923_v33 = vmax.f32 %v921_v32, 0.0  ;;  %v2215_v32 = vld [vmem:[#allocation14 + $0xa0] ss:$8 sps:$4 sm:$0xff]  }
 0x32f   :  { %v925_v34 = vmul.f32 %v923_v33, %v902_v12  ;;  %v929_v35 = vmul.f32 %v923_v33, %v904_v15  ;;  %v2220_v33 = vld [vmem:[#allocation14 + $0x94] ss:$8 sps:$4 sm:$0xff]  }
 0x331   :  { %927 = vst [vmem:[#allocation16 + $0x10] sm:$0xff] %v925_v34  ;;  %931 = vst [vmem:[#allocation16 + $0x18] sm:$0xff] %v929_v35  ;;  %v937_v36 = vpack.c.bf16 %v929_v35, %v928_v31  ;;  %v936_v37 = vpack.c.bf16 %v925_v34, %v924_v29  ;;  %v2212_v29 = vld [vmem:[#allocation14 + $0xb0] ss:$8 sps:$4 sm:$0xff]   ;;  %v2217_v31 = vld [vmem:[#allocation14 + $0xa4] ss:$8 sps:$4 sm:$0xff]  }
 0x332   :  { %v2218_v34 = vld [vmem:[#allocation14 + $0x90] ss:$8 sps:$4 sm:$0xff]   ;;  %v2223_v35 = vld [vmem:[#allocation14 + $0x84] ss:$8 sps:$4 sm:$0xff]  }
 0x333   :  { %1174 = vmatprep.mubr.bf16.mxu1 %v937_v36  ;;  %v2221_v36 = vld [vmem:[#allocation14 + $0x80] ss:$8 sps:$4 sm:$0xff]  }
 0x334   :  { %1175 = vmatmul.mubr.bf16.vlgmr.msra.gmra.mxu1 %v936_v37  ;;  %v1223_v37 = vld [vmem:[%s2646_s10] sm:$0x3]  ;;  %s2463_s10 = smov [#allocation16]  }
 0x335   :  { %1649 = vmatpush1.bf16.msra.mxu1 %v2176_v50  ;;  %v1232_v38 = vrot.slane %v1223_v37, %v2587_v28  ;;  %v1228_v40 = vrot.slane %v1223_v37, %v2592_v30  ;;  %s1712_s28 = sshll.u32 %s2463_s10, 4  ;;  %s1713_s28 = int_to_ptr.vmem [resolvable:$true] %s1712_s28 }
 0x336   :  { %1650 = vmatprep.subr.bf16.mxu1 %v2181_v52  ;;  %s2400_s29 = scalar_lea.vmem %s1713_s28, 512  ;;  %p2405_p8 = scmp.lt.s32.totalorder %s1713_s28, %s1713_s28 }
 0x337   :  { %p2401_p7 = scmp.ne.s32.totalorder %s1713_s28, %s2400_s29  ;;  %p2406_p9 = scmp.lt.s32.totalorder %s2400_s29, %s2400_s29 }
 0x339   :  { %1651 = vmatpush1.bf16.msra.mxu1 %v2179_v53  ;;  %p2407_p10 = por %p2406_p9, %p2405_p8 }
 0x33a   :  { %1652 = vmatprep.subr.bf16.mxu1 %v2184_v54 }
 0x33b   :  { %p2408_p11 = pnand %p2407_p10, %p2401_p7 }
 0x33d   :  { %1653 = vmatpush1.bf16.msra.mxu1 %v2182_v55 }
 0x33e   :  { %1654 = vmatprep.subr.bf16.mxu1 %v2187_v56 }
 0x341   :  { %1655 = vmatpush1.bf16.msra.mxu1 %v2185_v57 }
 0x342   :  { %1656 = vmatprep.subr.bf16.mxu1 %v2190_v58 }
 0x345   :  { %1657 = vmatpush1.bf16.msra.mxu1 %v2188_v59 }
 0x346   :  { %1658 = vmatprep.subr.bf16.mxu1 %v2193_v60 }
 0x349   :  { %1659 = vmatpush1.bf16.msra.mxu1 %v2191_v61 }
 0x34a   :  { %1660 = vmatprep.subr.bf16.mxu1 %v2196_v62 }
 0x34d   :  { %1661 = vmatpush1.bf16.msra.mxu1 %v2194_v63 }
 0x34e   :  { %1662 = vmatprep.subr.bf16.mxu1 %v2199_v0 }
 0x351   :  { %1663 = vmatpush1.bf16.msra.mxu1 %v2197_v1 }
 0x352   :  { %1664 = vmatprep.subr.bf16.mxu1 %v2202_v2 }
 0x355   :  { %1665 = vmatpush2.bf16.msra.mxu1 %v2200_v3 }
 0x356   :  { %1666 = vmatprep.subr.bf16.mxu1 %v2205_v4 }
 0x359   :  { %1667 = vmatpush2.bf16.msra.mxu1 %v2203_v5 }
 0x35a   :  { %1668 = vmatprep.subr.bf16.mxu1 %v2208_v23 }
 0x35d   :  { %1669 = vmatpush2.bf16.msra.mxu1 %v2206_v24 }
 0x35e   :  { %1670 = vmatprep.subr.bf16.mxu1 %v2211_v25 }
 0x361   :  { %1671 = vmatpush2.bf16.msra.mxu1 %v2209_v26 }
 0x362   :  { %1672 = vmatprep.subr.bf16.mxu1 %v2214_v27 }
 0x365   :  { %1673 = vmatpush2.bf16.msra.mxu1 %v2212_v29 }
 0x366   :  { %1674 = vmatprep.subr.bf16.mxu1 %v2217_v31 }
 0x369   :  { %1675 = vmatpush2.bf16.msra.mxu1 %v2215_v32 }
 0x36a   :  { %1676 = vmatprep.subr.bf16.mxu1 %v2220_v33 }
 0x36d   :  { %1677 = vmatpush2.bf16.msra.mxu1 %v2218_v34 }
 0x36e   :  { %1678 = vmatprep.subr.bf16.mxu1 %v2223_v35 }
 0x371   :  { %1679 = vmatpush2.bf16.msra.mxu1 %v2221_v36 }
 0x3f4   :  { %v1176_v8 = vpop.f32.mrf.mxu1 }
 0x3f5   :  { %v1177_v14 = vadd.f32 %v1176_v8, %v975_v9 }
 0x3f6   :  { %v1178_v10 = vpop.f32.mrf.mxu1 }
 0x3f7   :  { %v1179_v11 = vadd.f32 %v1178_v10, %v979_v7 }
 0x3f8   :  { %v1180_v12 = vpop.f32.mrf.mxu1 }
 0x3f9   :  { %v1181_v13 = vadd.f32 %v1180_v12, %v975_v9  ;;  %2244 = vtanh.f32 %v1179_v11 }
 0x3fa   :  { %v1182_v15 = vpop.f32.mrf.mxu1 }
 0x3fb   :  { %v1183_v16 = vadd.f32 %v1182_v15, %v979_v7  ;;  %2246 = vtanh.f32 %v1181_v13 }
 0x3fd   :  { %2248 = vtanh.f32 %v1183_v16 }
 0x3fe   :  { %2250 = vtanh.f32 %v1177_v14 }
 0x406   :  { %v2245_v17 = vpop.eup %2244 }
 0x408   :  { %v2247_v18 = vpop.eup %2246 }
 0x40a   :  { %v2249_v19 = vpop.eup %2248 }
 0x40b   :  { %v2251_v20 = vpop.eup %2250  ;;  %v1190_v21 = vpack.c.bf16 %v2249_v19, %v2245_v17 }
 0x40c   :  { %v1189_v22 = vpack.c.bf16 %v2247_v18, %v2251_v20 }
 0x40d   :  { %1427 = vmatprep.mubr.bf16.mxu0 %v1190_v21 }
 0x40e   :  { %1428 = vmatmul.mubr.bf16.vlgmr.msra.gmra.mxu0 %v1189_v22 }
 0x4ce   :  { %v1429_v39 = vpop.f32.mrf.mxu0 }
 0x4cf   :  { %v1430_v45 = vadd.f32 %v1429_v39, %v1228_v40 }
 0x4d0   :  { %v1431_v41 = vpop.f32.mrf.mxu0 }
 0x4d1   :  { %v1432_v42 = vadd.f32 %v1431_v41, %v1232_v38 }
 0x4d2   :  { %v1433_v43 = vpop.f32.mrf.mxu0 }
 0x4d3   :  { %v1434_v44 = vadd.f32 %v1433_v43, %v1228_v40  ;;  %2252 = vtanh.f32 %v1432_v42 }
 0x4d4   :  { %v1435_v46 = vpop.f32.mrf.mxu0 }
 0x4d5   :  { %v1436_v47 = vadd.f32 %v1435_v46, %v1232_v38  ;;  %2254 = vtanh.f32 %v1434_v44 }
 0x4d7   :  { %2256 = vtanh.f32 %v1436_v47 }
 0x4d8   :  { %2258 = vtanh.f32 %v1430_v45 }
 0x4e0   :  { %v2253_v48 = vpop.eup %2252 }
 0x4e2   :  { %v2255_v49 = vpop.eup %2254 }
 0x4e4   :  { %v2257_v50 = vpop.eup %2256 }
 0x4e5   :  { %v2259_v51 = vpop.eup %2258  ;;  %v1443_v52 = vpack.c.bf16 %v2257_v50, %v2253_v48 }
 0x4e6   :  { %v1442_v53 = vpack.c.bf16 %v2255_v49, %v2259_v51 }
 0x4e7   :  { %1680 = vmatprep.mubr.bf16.mxu1 %v1443_v52 }
 0x4e8   :  { %1681 = vmatmul.mubr.bf16.vlgmr.msra.gmra.mxu1 %v1442_v53 }
 0x4e9   :  { %2411 = shalt.err (!%p2408_p11)
}
 0x4ea   :  { %1718 = dma.vmem_to_hbm [thread:$0]  %s1713_s28, 512, %s2651_s15, [#allocation17], %s2458_s5, %s2458_s5, %s2459_s24  }
 0x4eb   :  { %v1476_v54 = vld [vmem:[%s2648_s12] sm:$0x3]  ;;  %s2464_s17 = smov [#allocation15]  }
 0x4ec   :  { %v1481_v55 = vrot.slane %v1476_v54, %v2592_v30  ;;  %v1485_v56 = vrot.slane %v1476_v54, %v2587_v28  ;;  %s1700_s18 = sshll.u32 %s2464_s17, 4  ;;  %s1701_s18 = int_to_ptr.vmem [resolvable:$true] %s1700_s18 }
 0x4ed   :  { %s2420_s12 = scalar_lea.vmem %s1701_s18, 512  ;;  %p2425_p13 = scmp.lt.s32.totalorder %s1701_s18, %s1701_s18 }
 0x4ee   :  { %p2421_p12 = scmp.ne.s32.totalorder %s1701_s18, %s2420_s12  ;;  %p2426_p0 = scmp.lt.s32.totalorder %s2420_s12, %s2420_s12 }
 0x4f0   :  { %p2427_p1 = por %p2426_p0, %p2425_p13 }
 0x4f2   :  { %p2428_p2 = pnand %p2427_p1, %p2421_p12 }
 0x5a8   :  { %v1682_v57 = vpop.f32.mrf.mxu1 }
 0x5a9   :  { %v1683_v58 = vadd.f32 %v1682_v57, %v1481_v55 }
 0x5aa   :  { %v1684_v59 = vpop.f32.mrf.mxu1 }
 0x5ab   :  { %1691 = vst [vmem:[#allocation15] sm:$0xff] %v1683_v58  ;;  %v1685_v60 = vadd.f32 %v1684_v59, %v1485_v56 }
 0x5ac   :  { %v1686_v61 = vpop.f32.mrf.mxu1 }
 0x5ad   :  { %1692 = vst [vmem:[#allocation15 + $0x8] sm:$0xff] %v1685_v60  ;;  %v1687_v62 = vadd.f32 %v1686_v61, %v1481_v55 }
 0x5ae   :  { %v1688_v63 = vpop.f32.mrf.mxu1 }
 0x5af   :  { %1693 = vst [vmem:[#allocation15 + $0x10] sm:$0xff] %v1687_v62  ;;  %v1689_v0 = vadd.f32 %v1688_v63, %v1485_v56 }
 0x5b1   :  { %1694 = vst [vmem:[#allocation15 + $0x18] sm:$0xff] %v1689_v0 }
 0x5b2   :  { %2431 = shalt.err (!%p2428_p2)
}
 0x5b3   :  { %1706 = dma.vmem_to_hbm [thread:$0]  %s1701_s18, 512, %s2650_s14, [#allocation5], %s2458_s5, %s2458_s5, %s2459_s24  }
 0x5b4   :  { %2448 = dma.done.wait [#allocation5], 512  }
 0x5b5   :  { %2449 = vsyncadd [#allocation5], 4294966784 }
 0x5b6   :  { %2450 = dma.done.wait [#allocation17], 512  }
 0x5b7   :  { %2451 = vsyncadd [#allocation17], 4294966784 }
 0x5b8   :  { %1725 = vsyncpa [#allocation4], 1 }
 0x5b9   :  { %1726 = vsyncpa [#allocation7], 1 }
 0x5ba   :  { %1727 = vsyncpa [#allocation10], 1 }
 0x5bb   :  { %1728 = vsyncpa [#allocation13], 1 }
 0x5bc   :  { %1729 = vsyncpa [#allocation5], 1 }
 0x5bd   :  { %1730 = vsyncpa [#allocation17], 1 }

</bundles_post_ra>
